<compile_context>
chip_gen: v7x
topology: tpu7x:2x2x1
jax: 0.10.0
libtpu: 0.0.40
codegen_flags: <defaults>
</compile_context>

<pallas_src>
from itertools import combinations

import numpy as np

import jax
import jax.numpy as jnp
from jax.experimental import pallas as pl
from jax.experimental.pallas import tpu as pltpu


# ----------------------------------------------------------------------------
# Pallas kernel: the whole fused NAM forward, unit-major (U, B, ...) layout.
# ----------------------------------------------------------------------------
def nam_fused_kernel(x_ref, w0_ref, b0_ref, w1_ref, b1_ref, w2z_ref, b2z_ref,
                     o_ref):
    """
    x_ref  : (U, B, 2)  f32   unit-major inputs (mains padded with a 0 column)
    w0_ref : (U, 2, H)  f32   first-layer weights (mains' second row is zero)
    b0_ref : (U, 1, H)  f32
    w1_ref : (U, H, H)  bf16  hidden-layer weights
    b1_ref : (U, 1, H)  f32
    w2z_ref: (U, H, O)  bf16  z-gated output weights  (z[u] * w2[u])
    b2z_ref: (1, O)     f32   z-reduced output bias   (sum_u z[u] * b2[u])
    o_ref  : (B, O)     f32
    """
    x = x_ref[...]
    w0 = w0_ref[...]

    # Layer 0: degenerate D in {1,2} contraction as two VPU broadcast
    # multiply-adds (mains' padded second column/row contribute exactly 0).
    h = (x[:, :, 0:1] * w0[:, 0:1, :]
         + x[:, :, 1:2] * w0[:, 1:2, :]
         + b0_ref[...])                                       # (U, B, H) f32
    h = jnp.maximum(h, 0.0)

    # Layer 1: per-unit (B,H)@(H,H) batched over U on the MXU; bf16 operands,
    # f32 accumulation; bias-add / ReLU kept in f32 (no bf16 VPU on v5e).
    h = jnp.einsum('ubh,uhk->ubk', h.astype(jnp.bfloat16), w1_ref[...],
                   preferred_element_type=jnp.float32) + b1_ref[...]
    h = jnp.maximum(h, 0.0)

    # Layer 2 fused with the z-weighted unit reduction (z already folded into
    # w2z / b2z wrapper-side):  out[b,o] = sum_u (h_u @ (z_u*w2_u))[b,o] + b2z.
    y = jnp.einsum('ubh,uho->ubo', h.astype(jnp.bfloat16), w2z_ref[...],
                   preferred_element_type=jnp.float32)        # (U, B, O)
    o_ref[...] = jnp.sum(y, axis=0) + b2z_ref[...]            # single (B,O) write


# ----------------------------------------------------------------------------
# Wrapper-side helpers.
# ----------------------------------------------------------------------------
def smooth_z(z, gamma):
    s = -2.0 / gamma ** 3 * z ** 3 + 3.0 / (2.0 * gamma) * z + 0.5
    return jnp.where(z <= -gamma / 2, jnp.zeros_like(z),
                     jnp.where(z >= gamma / 2, jnp.ones_like(z), s))


def pack_params(main_params, pair_params):
    """Static weight packing, done ONCE at parameter-init time (outside jit).

    Mains (D=1) are fused into the pair (D=2) layout by zero-padding the
    first-layer weights; the matching zero input column makes the pad
    contribute exactly 0.  w1 is stored as bf16 (MXU operand dtype); w2/b2
    stay f32 because the (tiny) z-gate fold happens per forward call.
    """
    w0m, b0m, w1m, b1m, w2m, b2m = main_params
    w0p, b0p, w1p, b1p, w2p, b2p = pair_params
    w0 = jnp.concatenate([jnp.pad(w0m, ((0, 0), (0, 1), (0, 0))), w0p], axis=0)
    b0 = jnp.concatenate([b0m, b0p], axis=0)[:, None, :]       # (U, 1, H)
    w1 = jnp.concatenate([w1m, w1p], axis=0).astype(jnp.bfloat16)  # (U, H, H)
    b1 = jnp.concatenate([b1m, b1p], axis=0)[:, None, :]       # (U, 1, H)
    w2 = jnp.concatenate([w2m, w2p], axis=0)                   # (U, H, O) f32
    b2 = jnp.concatenate([b2m, b2p], axis=0)                   # (U, O)    f32
    return dict(w0=w0, b0=b0, w1=w1, b1=b1, w2=w2, b2=b2)


def build_kernel_operands(packed, mains, pairs, z_main, z_pairs, gamma):
    """Per-call operand prep (tiny XLA ops): z-gate fold + input layout."""
    z = jnp.concatenate([smooth_z(z_main, gamma), smooth_z(z_pairs, gamma)])
    # Fold the z gating into the last layer (replaces the previous lane-sparse
    # (U*H,1)/(U,1) z inputs + in-kernel broadcast/reduce).
    w2z = (packed['w2'] * z[:, None, None]).astype(jnp.bfloat16)     # (U, H, O)
    b2z = jnp.sum(packed['b2'] * z[:, None], axis=0, keepdims=True)  # (1, O)
    # Unit-major (U, B, 2) input; mains get a zero second column.
    x_m = jnp.pad(mains[:, :, None], ((0, 0), (0, 0), (0, 1)))       # (B, F, 2)
    x = jnp.concatenate([x_m, pairs], axis=1).transpose(1, 0, 2)     # (U, B, 2)
    return (x, packed['w0'], packed['b0'], packed['w1'], packed['b1'], w2z, b2z)


def _round_up(n, m):
    return -(-n // m) * m


def _padded_vmem_bytes(shape, dtype):
    """VMEM footprint of one whole-array block: minor dim padded to 128 lanes,
    second-minor to the dtype's sublane tile (8 for f32, 16 for bf16)."""
    itemsize = np.dtype(dtype).itemsize
    sublane = 8 * (4 // itemsize)
    lead = int(np.prod(shape[:-2])) if len(shape) > 2 else 1
    return int(lead * _round_up(shape[-2], sublane)
               * _round_up(shape[-1], 128) * itemsize)


def nam_forward_pallas(packed, mains, pairs, z_main, z_pairs, gamma):
    B = mains.shape[0]
    O = packed['w2'].shape[-1]
    operands = build_kernel_operands(packed, mains, pairs, z_main, z_pairs, gamma)

    # Right-sized VMEM budget: single-buffered whole-array blocks (no grid ->
    # nothing to pipeline -> no double-buffering), plus headroom for in-kernel
    # intermediates and compiler scratch.  ~11 MiB here (vs. flat 48 MiB
    # before); comfortably inside v7x's 64 MiB physical VMEM.
    block_bytes = sum(_padded_vmem_bytes(a.shape, a.dtype) for a in operands)
    block_bytes += _padded_vmem_bytes((B, O), jnp.float32)
    vmem_limit = int(2 * block_bytes + (8 << 20))

    # TODO(synk): for production batch sizes, tile B with a leading "parallel"
    # grid axis (256 on v6e/v7x, 128 on v5e) keeping constant weight index_maps,
    # and on v7x split the unit axis across the two TensorCores.
    return pl.pallas_call(
        nam_fused_kernel,
        out_shape=jax.ShapeDtypeStruct((B, O), jnp.float32),
        in_specs=[pl.BlockSpec(memory_space=pltpu.MemorySpace.VMEM)] * len(operands),
        out_specs=pl.BlockSpec(memory_space=pltpu.MemorySpace.VMEM),
        compiler_params=pltpu.CompilerParams(vmem_limit_bytes=vmem_limit),
    )(*operands)


# ----------------------------------------------------------------------------
# Parameter setup (deterministic, mimicking the module's __init__ shapes).
# ----------------------------------------------------------------------------
def init_branch_params(key, n_units, d_in, n_hidden, n_output):
    ks = jax.random.split(key, 6)

    def u(k, shape, fan_in):
        bound = 1.0 / np.sqrt(fan_in)
        return jax.random.uniform(k, shape, jnp.float32, -bound, bound)

    w0 = u(ks[0], (n_units, d_in, n_hidden), d_in)
    b0 = u(ks[1], (n_units, n_hidden), d_in)
    w1 = u(ks[2], (n_units, n_hidden, n_hidden), n_hidden)
    b1 = u(ks[3], (n_units, n_hidden), n_hidden)
    w2 = u(ks[4], (n_units, n_hidden, n_output), n_hidden)
    b2 = u(ks[5], (n_units, n_output), n_hidden)
    return w0, b0, w1, b1, w2, b2


# ----------------------------------------------------------------------------
# References.
# ----------------------------------------------------------------------------
def ref_branch(x, w0, b0, w1, b1, w2, b2, z_s):
    """Pure-JAX f32 mirror of the PyTorch forward for one branch."""
    h = jnp.einsum('ijk,jkl->ijl', x, w0) + b0[None, :, :]
    h = jnp.maximum(h, 0.0)
    h = jnp.einsum('ijk,jkl->ijl', h, w1) + b1[None, :, :]
    h = jnp.maximum(h, 0.0)
    y = jnp.einsum('ijk,jkl->ijl', h, w2) + b2[None, :, :]
    return jnp.einsum('ijk,j->ik', y, z_s)


def matched_precision_ref(x, w0, b0, w1, b1, w2z, b2z):
    """jnp mirror of the kernel math (same bf16 operands / f32 accumulation)."""
    h = jnp.maximum(x[:, :, 0:1] * w0[:, 0:1, :]
                    + x[:, :, 1:2] * w0[:, 1:2, :] + b0, 0.0)
    h = jnp.maximum(jnp.einsum('ubh,uhk->ubk', h.astype(jnp.bfloat16), w1,
                               preferred_element_type=jnp.float32) + b1, 0.0)
    y = jnp.einsum('ubh,uho->ubo', h.astype(jnp.bfloat16), w2z,
                   preferred_element_type=jnp.float32)
    return jnp.sum(y, axis=0) + b2z


if __name__ == "__main__":
    # Small shapes consistent with the module.
    B, F, H, O = 8, 8, 32, 4
    gamma = 1.0
    pairs_list = list(combinations(range(F), 2))
    P = len(pairs_list)                                       # 28 -> U = 36

    key = jax.random.PRNGKey(0)
    k_main, k_pair, k_zm, k_zp, k_x = jax.random.split(key, 5)

    main_params = init_branch_params(k_main, F, 1, H, O)
    pair_params = init_branch_params(k_pair, P, 2, H, O)
    z_main = jax.random.uniform(k_zm, (F,), jnp.float32, -gamma / 100, gamma / 100)
    z_pairs = jax.random.uniform(k_zp, (P,), jnp.float32, -gamma / 100, gamma / 100)

    mains = jax.random.normal(k_x, (B, F), jnp.float32)       # (B, F)
    pair_idx = jnp.array(pairs_list, dtype=jnp.int32)         # (P, 2)
    pairs = mains[:, pair_idx]                                 # (B, P, 2)

    # One-time static packing (outside jit), then the fused Pallas forward.
    packed = pack_params(main_params, pair_params)
    fwd = jax.jit(nam_forward_pallas)
    out = jax.block_until_ready(fwd(packed, mains, pairs, z_main, z_pairs, gamma))

    # (1) Tight check against a jnp mirror of the exact kernel math.
    operands = build_kernel_operands(packed, mains, pairs, z_main, z_pairs, gamma)
    matched = matched_precision_ref(*operands)
    np.testing.assert_allclose(np.asarray(out), np.asarray(matched),
                               rtol=1e-3, atol=1e-3)

    # (2) Semantics check against the exact f32 module forward; tolerance
    #     reflects the bf16 matmul operands (f32 accumulation).
    zm_s = smooth_z(z_main, gamma)
    zp_s = smooth_z(z_pairs, gamma)
    ref = (ref_branch(mains[:, :, None], *main_params, zm_s)
           + ref_branch(pairs, *pair_params, zp_s))
    np.testing.assert_allclose(np.asarray(out), np.asarray(ref),
                               rtol=5e-2, atol=1e-1)

    print("KERNEL_OK")
</pallas_src>

<mosaic_0001>
module attributes {stable_mosaic.version = 11 : i64} {
  func.func @nam_fused_kernel(%arg0: memref<36x8x2xf32, #tpu.memory_space<vmem>>, %arg1: memref<36x2x32xf32, #tpu.memory_space<vmem>>, %arg2: memref<36x1x32xf32, #tpu.memory_space<vmem>>, %arg3: memref<36x32x32xbf16, #tpu.memory_space<vmem>>, %arg4: memref<36x1x32xf32, #tpu.memory_space<vmem>>, %arg5: memref<36x32x4xbf16, #tpu.memory_space<vmem>>, %arg6: memref<1x4xf32, #tpu.memory_space<vmem>>, %arg7: memref<8x4xf32, #tpu.memory_space<vmem>>) attributes {dimension_semantics = [], scalar_prefetch = 0 : i64, scratch_operands = 0 : i64, tpu.core_type = #tpu.core_type<tc>} {
    %c0 = arith.constant 0 : index
    %c0_0 = arith.constant 0 : index
    %c0_1 = arith.constant 0 : index
    %0 = vector.load %arg0[%c0, %c0_0, %c0_1] : memref<36x8x2xf32, #tpu.memory_space<vmem>>, vector<36x8x2xf32>
    %c0_2 = arith.constant 0 : index
    %c0_3 = arith.constant 0 : index
    %c0_4 = arith.constant 0 : index
    %1 = vector.load %arg1[%c0_2, %c0_3, %c0_4] : memref<36x2x32xf32, #tpu.memory_space<vmem>>, vector<36x2x32xf32>
    %2 = vector.extract_strided_slice %0 {offsets = [0, 0, 0], sizes = [36, 8, 1], strides = [1, 1, 1]} : vector<36x8x2xf32> to vector<36x8x1xf32>
    %3 = vector.extract_strided_slice %1 {offsets = [0, 0, 0], sizes = [36, 1, 32], strides = [1, 1, 1]} : vector<36x2x32xf32> to vector<36x1x32xf32>
    %4 = vector.broadcast %2 : vector<36x8x1xf32> to vector<36x8x32xf32>
    %5 = vector.broadcast %3 : vector<36x1x32xf32> to vector<36x8x32xf32>
    %6 = arith.mulf %4, %5 : vector<36x8x32xf32>
    %7 = vector.extract_strided_slice %0 {offsets = [0, 0, 1], sizes = [36, 8, 1], strides = [1, 1, 1]} : vector<36x8x2xf32> to vector<36x8x1xf32>
    %8 = vector.extract_strided_slice %1 {offsets = [0, 1, 0], sizes = [36, 1, 32], strides = [1, 1, 1]} : vector<36x2x32xf32> to vector<36x1x32xf32>
    %9 = vector.broadcast %7 : vector<36x8x1xf32> to vector<36x8x32xf32>
    %10 = vector.broadcast %8 : vector<36x1x32xf32> to vector<36x8x32xf32>
    %11 = arith.mulf %9, %10 : vector<36x8x32xf32>
    %12 = arith.addf %6, %11 : vector<36x8x32xf32>
    %c0_5 = arith.constant 0 : index
    %c0_6 = arith.constant 0 : index
    %c0_7 = arith.constant 0 : index
    %13 = vector.load %arg2[%c0_5, %c0_6, %c0_7] : memref<36x1x32xf32, #tpu.memory_space<vmem>>, vector<36x1x32xf32>
    %14 = vector.broadcast %13 : vector<36x1x32xf32> to vector<36x8x32xf32>
    %15 = arith.addf %12, %14 : vector<36x8x32xf32>
    %cst = arith.constant 0.000000e+00 : f32
    %16 = vector.broadcast %cst : f32 to vector<36x8x32xf32>
    %17 = arith.maximumf %15, %16 : vector<36x8x32xf32>
    %18 = arith.truncf %17 : vector<36x8x32xf32> to vector<36x8x32xbf16>
    %c0_8 = arith.constant 0 : index
    %c0_9 = arith.constant 0 : index
    %c0_10 = arith.constant 0 : index
    %19 = vector.load %arg3[%c0_8, %c0_9, %c0_10] : memref<36x32x32xbf16, #tpu.memory_space<vmem>>, vector<36x32x32xbf16>
    "tpu.trace_start"() <{level = 10 : i32, message = "ubh,uhk->ubk"}> : () -> ()
    %cst_11 = arith.constant dense<0.000000e+00> : vector<36x8x32xf32>
    %20 = tpu.matmul %18, %19, %cst_11 {dimension_numbers = #tpu.dot_dimension_numbers<[2], [1], [1], [2], [0, 0, 0, 1, 1, 2], [0], [0]>} : vector<36x8x32xbf16>, vector<36x32x32xbf16>, vector<36x8x32xf32> -> vector<36x8x32xf32>
    "tpu.trace_stop"() : () -> ()
    %c0_12 = arith.constant 0 : index
    %c0_13 = arith.constant 0 : index
    %c0_14 = arith.constant 0 : index
    %21 = vector.load %arg4[%c0_12, %c0_13, %c0_14] : memref<36x1x32xf32, #tpu.memory_space<vmem>>, vector<36x1x32xf32>
    %22 = vector.broadcast %21 : vector<36x1x32xf32> to vector<36x8x32xf32>
    %23 = arith.addf %20, %22 : vector<36x8x32xf32>
    %cst_15 = arith.constant 0.000000e+00 : f32
    %24 = vector.broadcast %cst_15 : f32 to vector<36x8x32xf32>
    %25 = arith.maximumf %23, %24 : vector<36x8x32xf32>
    %26 = arith.truncf %25 : vector<36x8x32xf32> to vector<36x8x32xbf16>
    %c0_16 = arith.constant 0 : index
    %c0_17 = arith.constant 0 : index
    %c0_18 = arith.constant 0 : index
    %27 = vector.load %arg5[%c0_16, %c0_17, %c0_18] : memref<36x32x4xbf16, #tpu.memory_space<vmem>>, vector<36x32x4xbf16>
    "tpu.trace_start"() <{level = 10 : i32, message = "ubh,uho->ubo"}> : () -> ()
    %cst_19 = arith.constant dense<0.000000e+00> : vector<36x8x4xf32>
    %28 = tpu.matmul %26, %27, %cst_19 {dimension_numbers = #tpu.dot_dimension_numbers<[2], [1], [1], [2], [0, 0, 0, 1, 1, 2], [0], [0]>} : vector<36x8x32xbf16>, vector<36x32x4xbf16>, vector<36x8x4xf32> -> vector<36x8x4xf32>
    "tpu.trace_stop"() : () -> ()
    %cst_20 = arith.constant dense<0.000000e+00> : vector<8x4xf32>
    %29 = vector.multi_reduction <add>, %28, %cst_20 [0] : vector<36x8x4xf32> to vector<8x4xf32>
    %c0_21 = arith.constant 0 : index
    %c0_22 = arith.constant 0 : index
    %30 = vector.load %arg6[%c0_21, %c0_22] : memref<1x4xf32, #tpu.memory_space<vmem>>, vector<1x4xf32>
    %31 = vector.broadcast %30 : vector<1x4xf32> to vector<8x4xf32>
    %32 = arith.addf %29, %31 : vector<8x4xf32>
    %c0_23 = arith.constant 0 : index
    %c0_24 = arith.constant 0 : index
    %33 = vector.load %arg7[%c0_23, %c0_24] : memref<8x4xf32, #tpu.memory_space<vmem>>, vector<8x4xf32>
    tpu.vector_store %arg7[%c0_23, %c0_24], %32 {strides = array<i32>} : memref<8x4xf32, #tpu.memory_space<vmem>>, vector<8x4xf32>,
    return
  }
}

</mosaic_0001>

<bundles_post_ra>
// kernel: nam_forward_pallas.1
= control target key start
LH: loop header
LB: loop body
LE: loop exit
PB: predicated region body
PF: predicated region fallthrough
CT: control target
= control target key end

     0   :  { %v7071_v0 = vmov 0   ;;  %v7072_v3 = vmov 1   ;;  %v7073_v5 = vmov 0.0   ;;  %vm7074_vm0 = vmmov 0   ;;  %s8458_s0 = inlined_call_operand.vmem [shape: f32[36,8,2], index: 0, kind: input, shape index: {}]   ;;  %s8459_s3 = inlined_call_operand.vmem [shape: bf16[36,32,32], index: 3, kind: input, shape index: {}]   ;;  %s8460_s1 = inlined_call_operand.vmem [shape: f32[36,2,32], index: 1, kind: input, shape index: {}]   ;;  %s8461_s2 = inlined_call_operand.vmem [shape: f32[36,1,32], index: 2, kind: input, shape index: {}]   ;;  %s8462_s5 = inlined_call_operand.vmem [shape: bf16[36,32,4], index: 5, kind: input, shape index: {}]   ;;  %s8463_s4 = inlined_call_operand.vmem [shape: f32[36,1,32], index: 4, kind: input, shape index: {}]   ;;  %s8464_s6 = inlined_call_operand.vmem [shape: f32[1,4], index: 6, kind: input, shape index: {}]   ;;  %s8465_s7 = inlined_call_operand.vmem [shape: f32[8,4], index: 7, kind: output, shape index: {}]  }
   0x1   :  { %6924 = vset.pattern.permute.xlu1 %v7071_v0  ;;  %6922 = vset.pattern.permute.xlu0 %v7071_v0  ;;  %v28_v1 = vld [vmem:[%s8458_s0 + $0x8] sm:$0xff]  ;;  %v27_v2 = vld [vmem:[%s8458_s0] sm:$0xff]  ;;  %v29_v4 = vld [vmem:[%s8458_s0 + $0x10] sm:$0xff]  ;;  %v279_v37 = vlaneseq  ;;  %vm1587_vm1 = vcmask 261120   ;;  %vm5752_vm2 = vcmask 31744  }
   0x2   :  { %106 = vperm.xlu1 %6924, %v28_v1   ;;  %101 = vperm.xlu0 %6922, %v27_v2   ;;  %v30_v6 = vld [vmem:[%s8458_s0 + $0x18] sm:$0xff]  ;;  %v6927_v7 = vld [vmem:[%s8459_s3] sm:$0xff]   ;;  %v6928_v8 = vld [vmem:[%s8459_s3 + $0x10] sm:$0xff]  }
   0x3   :  { %6342 = vmatprep.subr.bf16.mxu0 %v7073_v5  ;;  %6350 = vmatprep.subr.bf16.mxu1 %v7073_v5  ;;  %v31_v9 = vld [vmem:[%s8458_s0 + $0x20] sm:$0xff]  ;;  %v6929_v10 = vld [vmem:[%s8459_s3 + $0x8] sm:$0xff]   ;;  %v6930_v11 = vld [vmem:[%s8459_s3 + $0x18] sm:$0xff]   ;;  %v280_v39 = vshrl.u32 %v279_v37, 7 }
   0x4   :  { %6343 = vmatpush3.bf16.msra.mxu0 %v6927_v7  ;;  %6351 = vmatpush3.bf16.msra.mxu1 %v6928_v8  ;;  %v32_v12 = vld [vmem:[%s8458_s0 + $0x28] sm:$0xff]  ;;  %v33_v13 = vld [vmem:[%s8458_s0 + $0x30] sm:$0xff]  ;;  %v34_v14 = vld [vmem:[%s8458_s0 + $0x38] sm:$0xff] }
   0x5   :  { %6344 = vmatprep.subr.bf16.mxu0 %v7073_v5  ;;  %6352 = vmatprep.subr.bf16.mxu1 %v7073_v5  ;;  %v35_v15 = vld [vmem:[%s8458_s0 + $0x40] sm:$0xff]  ;;  %v36_v16 = vld [vmem:[%s8458_s0 + $0x48] sm:$0xff]  ;;  %v37_v17 = vld [vmem:[%s8458_s0 + $0x50] sm:$0xff]  ;;  %v7233_v41 = vsub.s32 0, %v280_v39  ;;  %v7235_v42 = vsub.s32 1, %v280_v39 }
   0x6   :  { %6925 = vset.pattern.permute.xlu1 %v7072_v3  ;;  %6923 = vset.pattern.permute.xlu0 %v7072_v3  ;;  %v38_v18 = vld [vmem:[%s8458_s0 + $0x58] sm:$0xff]  ;;  %v39_v19 = vld [vmem:[%s8458_s0 + $0x60] sm:$0xff]  ;;  %v40_v20 = vld [vmem:[%s8458_s0 + $0x68] sm:$0xff] }
   0x7   :  { %464 = vperm.xlu1 %6925, %v28_v1   ;;  %460 = vperm.xlu0 %6923, %v27_v2   ;;  %v41_v21 = vld [vmem:[%s8458_s0 + $0x70] sm:$0xff]  ;;  %v42_v22 = vld [vmem:[%s8458_s0 + $0x78] sm:$0xff]  ;;  %v43_v23 = vld [vmem:[%s8458_s0 + $0x80] sm:$0xff] }
   0x8   :  { %6346 = vmatprep.mubr.msk.bf16.mxu0 %vm7074_vm0, %v7073_v5  ;;  %6354 = vmatprep.mubr.msk.bf16.mxu1 %vm7074_vm0, %v7073_v5  ;;  %v44_v24 = vld [vmem:[%s8458_s0 + $0x88] sm:$0xff]  ;;  %v45_v25 = vld [vmem:[%s8458_s0 + $0x90] sm:$0xff]  ;;  %v46_v26 = vld [vmem:[%s8458_s0 + $0x98] sm:$0xff] }
   0x9   :  { %6345 = vmatpush3.bf16.msra.mxu0 %v6929_v10  ;;  %6353 = vmatpush3.bf16.msra.mxu1 %v6930_v11  ;;  %v47_v27 = vld [vmem:[%s8458_s0 + $0xa0] sm:$0xff]  ;;  %v48_v28 = vld [vmem:[%s8458_s0 + $0xa8] sm:$0xff]  ;;  %v49_v29 = vld [vmem:[%s8458_s0 + $0xb0] sm:$0xff] }
   0xa   :  { %6358 = vmatprep.subr.bf16.mxu0 %v7073_v5  ;;  %6366 = vmatprep.subr.bf16.mxu1 %v7073_v5  ;;  %v50_v30 = vld [vmem:[%s8458_s0 + $0xb8] sm:$0xff]  ;;  %v51_v31 = vld [vmem:[%s8458_s0 + $0xc0] sm:$0xff]  ;;  %v52_v32 = vld [vmem:[%s8458_s0 + $0xc8] sm:$0xff] }
   0xb   :  { %6926 = vset.pattern.permute.xlu1 %v7071_v0  ;;  %468 = vperm.xlu0 %6923, %v29_v4   ;;  %v53_v33 = vld [vmem:[%s8458_s0 + $0xd0] sm:$0xff]  ;;  %v54_v34 = vld [vmem:[%s8458_s0 + $0xd8] sm:$0xff]  ;;  %v55_v35 = vld [vmem:[%s8458_s0 + $0xe0] sm:$0xff] }
   0xc   :  { %111 = vperm.xlu1 %6926, %v29_v4   ;;  %v56_v36 = vld [vmem:[%s8458_s0 + $0xe8] sm:$0xff]  ;;  %v57_v38 = vld [vmem:[%s8458_s0 + $0xf0] sm:$0xff]  ;;  %v58_v40 = vld [vmem:[%s8458_s0 + $0xf8] sm:$0xff] }
   0xd   :  { %v63_v43 = vld [vmem:[%s8460_s1] sm:$0x3]  ;;  %v64_v44 = vld [vmem:[%s8460_s1 + $0x2] sm:$0x3]  ;;  %v65_v52 = vld [vmem:[%s8460_s1 + $0x4] sm:$0x3] }
   0xe   :  { %v59_v45 = vld [vmem:[%s8458_s0 + $0x100] sm:$0xff]  ;;  %v282_v48 = vrot.slane %v63_v43, %v7233_v41  ;;  %v286_v49 = vrot.slane %v64_v44, %v7233_v41  ;;  %v610_v50 = vrot.slane %v64_v44, %v7235_v42  ;;  %v606_v51 = vrot.slane %v63_v43, %v7235_v42  ;;  %v60_v53 = vld [vmem:[%s8458_s0 + $0x108] sm:$0xff]  ;;  %v61_v0 = vld [vmem:[%s8458_s0 + $0x110] sm:$0xff] }
   0xf   :  { %472 = vperm.xlu0 %6923, %v30_v6   ;;  %v614_v56 = vrot.slane %v65_v52, %v7235_v42  ;;  %v5838_v59 = vld [vmem:[%s8461_s2 + $0x1] ss:$0 sm:$0xff]  ;;  %v5837_v62 = vld [vmem:[%s8461_s2] ss:$0 sm:$0xff]  ;;  %v290_v63 = vrot.slane %v65_v52, %v7233_v41  ;;  %v66_v1 = vld [vmem:[%s8460_s1 + $0x6] sm:$0x3] }
  0x10   :  { %116 = vperm.xlu1 %6926, %v30_v6   ;;  %v618_v10 = vrot.slane %v66_v1, %v7235_v42 }
  0x13   :  { %476 = vperm.xlu0 %6923, %v31_v9  }
  0x14   :  { %121 = vperm.xlu1 %6926, %v31_v9  }
  0x17   :  { %480 = vperm.xlu0 %6923, %v32_v12  }
  0x18   :  { %126 = vperm.xlu1 %6926, %v32_v12   ;;  %v294_v12 = vrot.slane %v66_v1, %v7233_v41 }
  0x1b   :  { %484 = vperm.xlu0 %6923, %v33_v13  }
  0x1c   :  { %131 = vperm.xlu1 %6926, %v33_v13   ;;  %v62_v13 = vld [vmem:[%s8458_s0 + $0x118] sm:$0xff] }
  0x1f   :  { %488 = vperm.xlu0 %6923, %v34_v14  }
  0x20   :  { %136 = vperm.xlu1 %6926, %v34_v14   ;;  %v67_v14 = vld [vmem:[%s8460_s1 + $0x8] sm:$0x3] }
  0x23   :  { %492 = vperm.xlu0 %6923, %v35_v15  }
  0x24   :  { %141 = vperm.xlu1 %6926, %v35_v15  }
  0x27   :  { %496 = vperm.xlu0 %6923, %v36_v16  }
  0x28   :  { %146 = vperm.xlu1 %6926, %v36_v16  }
  0x2b   :  { %500 = vperm.xlu0 %6923, %v37_v17  }
  0x2c   :  { %151 = vperm.xlu1 %6926, %v37_v17   ;;  %v5839_v17 = vld [vmem:[%s8461_s2 + $0x2] ss:$0 sm:$0xff] }
  0x2f   :  { %504 = vperm.xlu0 %6923, %v38_v18  }
  0x30   :  { %156 = vperm.xlu1 %6926, %v38_v18  }
  0x33   :  { %508 = vperm.xlu0 %6923, %v39_v19  }
  0x34   :  { %161 = vperm.xlu1 %6926, %v39_v19  }
  0x37   :  { %512 = vperm.xlu0 %6923, %v40_v20  }
  0x38   :  { %166 = vperm.xlu1 %6926, %v40_v20   ;;  %v6931_v20 = vld [vmem:[%s8459_s3 + $0x20] sm:$0xff]  }
  0x3b   :  { %516 = vperm.xlu0 %6923, %v41_v21  }
  0x3c   :  { %171 = vperm.xlu1 %6926, %v41_v21   ;;  %v6932_v21 = vld [vmem:[%s8459_s3 + $0x30] sm:$0xff]  }
  0x3f   :  { %520 = vperm.xlu0 %6923, %v42_v22  }
  0x40   :  { %176 = vperm.xlu1 %6926, %v42_v22  }
  0x43   :  { %524 = vperm.xlu0 %6923, %v43_v23  }
  0x44   :  { %181 = vperm.xlu1 %6926, %v43_v23  }
  0x47   :  { %528 = vperm.xlu0 %6923, %v44_v24  }
  0x48   :  { %186 = vperm.xlu1 %6926, %v44_v24  }
  0x4b   :  { %532 = vperm.xlu0 %6923, %v45_v25  }
  0x4c   :  { %191 = vperm.xlu1 %6926, %v45_v25  }
  0x4f   :  { %536 = vperm.xlu0 %6923, %v46_v26  }
  0x50   :  { %196 = vperm.xlu1 %6926, %v46_v26   ;;  %v622_v26 = vrot.slane %v67_v14, %v7235_v42 }
  0x53   :  { %540 = vperm.xlu0 %6923, %v47_v27  }
  0x54   :  { %201 = vperm.xlu1 %6926, %v47_v27  }
  0x57   :  { %544 = vperm.xlu0 %6923, %v48_v28  }
  0x58   :  { %206 = vperm.xlu1 %6926, %v48_v28  }
  0x5b   :  { %548 = vperm.xlu0 %6923, %v49_v29  }
  0x5c   :  { %211 = vperm.xlu1 %6926, %v49_v29   ;;  %v298_v29 = vrot.slane %v67_v14, %v7233_v41 }
  0x5f   :  { %552 = vperm.xlu0 %6923, %v50_v30  }
  0x60   :  { %216 = vperm.xlu1 %6926, %v50_v30   ;;  %v68_v30 = vld [vmem:[%s8460_s1 + $0xa] sm:$0x3] }
  0x61   :  { %v626_v39 = vrot.slane %v68_v30, %v7235_v42  ;;  %v302_v44 = vrot.slane %v68_v30, %v7233_v41 }
  0x63   :  { %556 = vperm.xlu0 %6923, %v51_v31  }
  0x64   :  { %221 = vperm.xlu1 %6926, %v51_v31   ;;  %v5840_v31 = vld [vmem:[%s8461_s2 + $0x3] ss:$0 sm:$0xff] }
  0x67   :  { %560 = vperm.xlu0 %6923, %v52_v32  }
  0x68   :  { %226 = vperm.xlu1 %6926, %v52_v32  }
  0x6b   :  { %564 = vperm.xlu0 %6923, %v53_v33  }
  0x6c   :  { %231 = vperm.xlu1 %6926, %v53_v33  }
  0x6f   :  { %568 = vperm.xlu0 %6923, %v54_v34  }
  0x70   :  { %236 = vperm.xlu1 %6926, %v54_v34   ;;  %v6933_v34 = vld [vmem:[%s8459_s3 + $0x28] sm:$0xff]  }
  0x73   :  { %572 = vperm.xlu0 %6923, %v55_v35  }
  0x74   :  { %241 = vperm.xlu1 %6926, %v55_v35   ;;  %v6934_v35 = vld [vmem:[%s8459_s3 + $0x38] sm:$0xff]  }
  0x77   :  { %576 = vperm.xlu0 %6923, %v56_v36  }
  0x78   :  { %246 = vperm.xlu1 %6926, %v56_v36  }
  0x7b   :  { %580 = vperm.xlu0 %6923, %v57_v38  }
  0x7c   :  { %251 = vperm.xlu1 %6926, %v57_v38  }
  0x7f   :  { %584 = vperm.xlu0 %6923, %v58_v40  }
  0x80   :  { %256 = vperm.xlu1 %6926, %v58_v40  }
  0x81   :  { %v102_v46 = vpop.permute.xlu0 %101  ;;  %v107_v47 = vpop.permute.xlu1 %106 }
  0x82   :  { %v423_v57 = vmul.f32 %v282_v48, %v102_v46  ;;  %v424_v58 = vmul.f32 %v286_v49, %v107_v47  ;;  %v5841_v46 = vld [vmem:[%s8461_s2 + $0x4] ss:$0 sm:$0xff] }
  0x83   :  { %588 = vperm.xlu0 %6923, %v59_v45  }
  0x84   :  { %261 = vperm.xlu1 %6926, %v59_v45   ;;  %v69_v45 = vld [vmem:[%s8460_s1 + $0xc] sm:$0x3] }
  0x86   :  { %v465_v54 = vpop.permute.xlu1 %464  ;;  %v461_v55 = vpop.permute.xlu0 %460 }
  0x87   :  { %v748_v60 = vmul.f32 %v610_v50, %v465_v54  ;;  %v747_v61 = vmul.f32 %v606_v51, %v461_v55  ;;  %592 = vperm.xlu0 %6923, %v60_v53   ;;  %v6935_v50 = vld [vmem:[%s8459_s3 + $0x40] sm:$0xff]   ;;  %v630_v54 = vrot.slane %v69_v45, %v7235_v42  ;;  %v6936_v55 = vld [vmem:[%s8459_s3 + $0x50] sm:$0xff]  }
  0x88   :  { %266 = vperm.xlu1 %6926, %v60_v53  }
  0x89   :  { %v784_v2 = vadd.f32 %v748_v60, %v424_v58  ;;  %v783_v3 = vadd.f32 %v747_v61, %v423_v57  ;;  %v70_v60 = vld [vmem:[%s8460_s1 + $0xe] sm:$0x3]  ;;  %v5842_v61 = vld [vmem:[%s8461_s2 + $0x5] ss:$0 sm:$0xff] }
  0x8a   :  { %v469_v4 = vpop.permute.xlu0 %468 }
  0x8b   :  { %v1072_v6 = vadd.f32 %v5838_v59, %v784_v2  ;;  %v1071_v7 = vadd.f32 %v5837_v62, %v783_v3  ;;  %v749_v8 = vmul.f32 %v614_v56, %v469_v4  ;;  %v112_v9 = vpop.permute.xlu1 %111  ;;  %596 = vperm.xlu0 %6923, %v61_v0   ;;  %v306_v59 = vrot.slane %v69_v45, %v7233_v41  ;;  %v5843_v3 = vld [vmem:[%s8461_s2 + $0x6] ss:$0 sm:$0xff] }
  0x8c   :  { %v425_v11 = vmul.f32 %v290_v63, %v112_v9  ;;  %271 = vperm.xlu1 %6926, %v61_v0   ;;  %v6937_v0 = vld [vmem:[%s8459_s3 + $0x48] sm:$0xff]  }
  0x8d   :  { %v1108_v15 = vmax.f32 %v1072_v6, 0.0  ;;  %v1107_v16 = vmax.f32 %v1071_v7, 0.0  ;;  %v634_v6 = vrot.slane %v70_v60, %v7235_v42  ;;  %v6938_v7 = vld [vmem:[%s8459_s3 + $0x58] sm:$0xff]  }
  0x8e   :  { %v785_v18 = vadd.f32 %v749_v8, %v425_v11  ;;  %v473_v19 = vpop.permute.xlu0 %472  ;;  %v6939_v11 = vld [vmem:[%s8459_s3 + $0x60] sm:$0xff]  }
  0x8f   :  { %v1144_v22 = vpack.c.bf16 %v1108_v15, %v1108_v15  ;;  %v1143_v23 = vpack.c.bf16 %v1107_v16, %v1107_v16  ;;  %v750_v24 = vmul.f32 %v618_v10, %v473_v19  ;;  %v117_v25 = vpop.permute.xlu1 %116  ;;  %600 = vperm.xlu0 %6923, %v62_v13   ;;  %v310_v10 = vrot.slane %v70_v60, %v7233_v41  ;;  %v6940_v16 = vld [vmem:[%s8459_s3 + $0x70] sm:$0xff]  }
  0x90   :  { %v1073_v27 = vadd.f32 %v5839_v17, %v785_v18  ;;  %v426_v28 = vmul.f32 %v294_v12, %v117_v25  ;;  %276 = vperm.xlu1 %6926, %v62_v13   ;;  %v71_v12 = vld [vmem:[%s8460_s1 + $0x10] sm:$0x3]  ;;  %v72_v17 = vld [vmem:[%s8460_s1 + $0x12] sm:$0x3] }
  0x91   :  { %6347 = vmatmul.mubr.msk.bf16.vlgmr.msra.gmra.mrb[0].mxu0 %vm1587_vm1, %v1143_v23  ;;  %6355 = vmatmul.mubr.msk.bf16.vlgmr.msra.gmra.mrb[0].mxu1 %vm1587_vm1, %v1144_v22  ;;  %v638_v22 = vrot.slane %v71_v12, %v7235_v42 }
  0x92   :  { %v786_v32 = vadd.f32 %v750_v24, %v426_v28  ;;  %6359 = vmatpush3.bf16.msra.mxu0 %v6931_v20  ;;  %v477_v33 = vpop.permute.xlu0 %476  ;;  %6367 = vmatpush3.bf16.msra.mxu1 %v6932_v21  ;;  %v1109_v36 = vmax.f32 %v1073_v27, 0.0  ;;  %v5844_v20 = vld [vmem:[%s8461_s2 + $0x7] ss:$0 sm:$0xff]  ;;  %v6941_v27 = vld [vmem:[%s8459_s3 + $0x68] sm:$0xff]  }
  0x93   :  { %v751_v37 = vmul.f32 %v622_v26, %v477_v33  ;;  %v122_v38 = vpop.permute.xlu1 %121  ;;  %6360 = vmatprep.subr.bf16.mxu0 %v7073_v5  ;;  %6368 = vmatprep.subr.bf16.mxu1 %v7073_v5  ;;  %v314_v26 = vrot.slane %v71_v12, %v7233_v41  ;;  %v76_v12 = vld [vmem:[%s8460_s1 + $0x1a] sm:$0x3] }
  0x94   :  { %v1074_v40 = vadd.f32 %v5840_v31, %v786_v32  ;;  %v427_v43 = vmul.f32 %v298_v29, %v122_v38  ;;  %6362 = vmatprep.mubr.msk.bf16.mxu0 %vm7074_vm0, %v7073_v5  ;;  %6370 = vmatprep.mubr.msk.bf16.mxu1 %vm7074_vm0, %v7073_v5  ;;  %v1145_v51 = vpack.c.bf16 %v1109_v36, %v1109_v36  ;;  %v6942_v31 = vld [vmem:[%s8459_s3 + $0x78] sm:$0xff]   ;;  %v73_v32 = vld [vmem:[%s8460_s1 + $0x14] sm:$0x3] }
  0x95   :  { %v642_v36 = vrot.slane %v72_v17, %v7235_v42 }
  0x96   :  { %v1110_v47 = vmax.f32 %v1074_v40, 0.0  ;;  %v787_v48 = vadd.f32 %v751_v37, %v427_v43  ;;  %6361 = vmatpush3.bf16.msra.mxu0 %v6933_v34  ;;  %v481_v49 = vpop.permute.xlu0 %480  ;;  %6369 = vmatpush3.bf16.msra.mxu1 %v6934_v35  ;;  %v5845_v34 = vld [vmem:[%s8461_s2 + $0x8] ss:$0 sm:$0xff]  ;;  %v6943_v40 = vld [vmem:[%s8459_s3 + $0x80] sm:$0xff]  }
  0x97   :  { %v752_v52 = vmul.f32 %v626_v39, %v481_v49  ;;  %v127_v53 = vpop.permute.xlu1 %126  ;;  %6374 = vmatprep.subr.bf16.mxu0 %v7073_v5  ;;  %6382 = vmatprep.subr.bf16.mxu1 %v7073_v5  ;;  %v318_v39 = vrot.slane %v72_v17, %v7233_v41 }
  0x98   :  { %v1146_v56 = vpack.c.bf16 %v1110_v47, %v1110_v47  ;;  %v1075_v57 = vadd.f32 %v5841_v46, %v787_v48  ;;  %v428_v58 = vmul.f32 %v302_v44, %v127_v53  ;;  %v6944_v46 = vld [vmem:[%s8459_s3 + $0x90] sm:$0xff]  }
  0x99   :  { %6363 = vmatmul.mubr.msk.bf16.vlgmr.msra.gmra.mrb[4].mxu0 %vm1587_vm1, %v1145_v51  ;;  %v74_v47 = vld [vmem:[%s8460_s1 + $0x16] sm:$0x3] }
  0x9a   :  { %v788_v62 = vadd.f32 %v752_v52, %v428_v58  ;;  %6375 = vmatpush3.bf16.msra.mxu0 %v6935_v50  ;;  %6371 = vmatmul.mubr.msk.bf16.vlgmr.msra.gmra.mrb[4].mxu1 %vm1587_vm1, %v1146_v56  ;;  %v485_v63 = vpop.permute.xlu0 %484  ;;  %v1111_v1 = vmax.f32 %v1075_v57, 0.0  ;;  %v5846_v50 = vld [vmem:[%s8461_s2 + $0x9] ss:$0 sm:$0xff]  ;;  %v646_v52 = vrot.slane %v73_v32, %v7235_v42  ;;  %v322_v56 = vrot.slane %v73_v32, %v7233_v41 }
  0x9b   :  { %v753_v2 = vmul.f32 %v630_v54, %v485_v63  ;;  %v132_v4 = vpop.permute.xlu1 %131  ;;  %6383 = vmatpush3.bf16.msra.mxu1 %v6936_v55  ;;  %6376 = vmatprep.subr.bf16.mxu0 %v7073_v5  ;;  %v6945_v57 = vld [vmem:[%s8459_s3 + $0x88] sm:$0xff]  }
  0x9c   :  { %v1076_v8 = vadd.f32 %v5842_v61, %v788_v62  ;;  %v429_v9 = vmul.f32 %v306_v59, %v132_v4  ;;  %6384 = vmatprep.subr.bf16.mxu1 %v7073_v5  ;;  %6378 = vmatprep.mubr.msk.bf16.mxu0 %vm7074_vm0, %v7073_v5  ;;  %v1147_v18 = vpack.c.bf16 %v1111_v1, %v1111_v1  ;;  %v6946_v61 = vld [vmem:[%s8459_s3 + $0x98] sm:$0xff]  }
  0x9d   :  { %6386 = vmatprep.mubr.msk.bf16.mxu1 %vm7074_vm0, %v7073_v5  ;;  %v75_v62 = vld [vmem:[%s8460_s1 + $0x18] sm:$0x3] }
  0x9e   :  { %v1112_v13 = vmax.f32 %v1076_v8, 0.0  ;;  %v789_v14 = vadd.f32 %v753_v2, %v429_v9  ;;  %6377 = vmatpush3.bf16.msra.mxu0 %v6937_v0  ;;  %v489_v15 = vpop.permute.xlu0 %488  ;;  %v5847_v0 = vld [vmem:[%s8461_s2 + $0xa] ss:$0 sm:$0xff]  ;;  %v650_v2 = vrot.slane %v74_v47, %v7235_v42  ;;  %v654_v17 = vrot.slane %v75_v62, %v7235_v42 }
  0x9f   :  { %v754_v19 = vmul.f32 %v634_v6, %v489_v15  ;;  %v137_v21 = vpop.permute.xlu1 %136  ;;  %6385 = vmatpush3.bf16.msra.mxu1 %v6938_v7  ;;  %6390 = vmatprep.subr.bf16.mxu0 %v7073_v5  ;;  %v326_v6 = vrot.slane %v74_v47, %v7233_v41  ;;  %v6947_v7 = vld [vmem:[%s8459_s3 + $0xa0] sm:$0xff]   ;;  %v5848_v15 = vld [vmem:[%s8461_s2 + $0xb] ss:$0 sm:$0xff] }
  0xa0   :  { %v1148_v23 = vpack.c.bf16 %v1112_v13, %v1112_v13  ;;  %v1077_v24 = vadd.f32 %v5843_v3, %v789_v14  ;;  %v430_v25 = vmul.f32 %v310_v10, %v137_v21  ;;  %6398 = vmatprep.subr.bf16.mxu1 %v7073_v5  ;;  %v330_v21 = vrot.slane %v75_v62, %v7233_v41 }
  0xa1   :  { %6379 = vmatmul.mubr.msk.bf16.vlgmr.msra.gmra.mrb[8].mxu0 %vm1587_vm1, %v1147_v18 }
  0xa2   :  { %v1113_v28 = vmax.f32 %v1077_v24, 0.0  ;;  %v790_v29 = vadd.f32 %v754_v19, %v430_v25  ;;  %6391 = vmatpush3.bf16.msra.mxu0 %v6939_v11  ;;  %6387 = vmatmul.mubr.msk.bf16.vlgmr.msra.gmra.mrb[8].mxu1 %vm1587_vm1, %v1148_v23  ;;  %v493_v30 = vpop.permute.xlu0 %492  ;;  %v6948_v11 = vld [vmem:[%s8459_s3 + $0xb0] sm:$0xff]  }
  0xa3   :  { %v755_v33 = vmul.f32 %v638_v22, %v493_v30  ;;  %v142_v35 = vpop.permute.xlu1 %141  ;;  %6399 = vmatpush3.bf16.msra.mxu1 %v6940_v16  ;;  %6392 = vmatprep.subr.bf16.mxu0 %v7073_v5  ;;  %v6949_v22 = vld [vmem:[%s8459_s3 + $0xa8] sm:$0xff]  }
  0xa4   :  { %v1078_v37 = vadd.f32 %v5844_v20, %v790_v29  ;;  %v431_v38 = vmul.f32 %v314_v26, %v142_v35  ;;  %6400 = vmatprep.subr.bf16.mxu1 %v7073_v5  ;;  %6394 = vmatprep.mubr.msk.bf16.mxu0 %vm7074_vm0, %v7073_v5  ;;  %v1149_v48 = vpack.c.bf16 %v1113_v28, %v1113_v28  ;;  %v6950_v26 = vld [vmem:[%s8459_s3 + $0xb8] sm:$0xff]   ;;  %v5849_v29 = vld [vmem:[%s8461_s2 + $0xc] ss:$0 sm:$0xff]  ;;  %v6951_v35 = vld [vmem:[%s8459_s3 + $0xc0] sm:$0xff]  }
  0xa5   :  { %6402 = vmatprep.mubr.msk.bf16.mxu1 %vm7074_vm0, %v7073_v5 }
  0xa6   :  { %v1114_v43 = vmax.f32 %v1078_v37, 0.0  ;;  %v791_v44 = vadd.f32 %v755_v33, %v431_v38  ;;  %6393 = vmatpush3.bf16.msra.mxu0 %v6941_v27  ;;  %v497_v45 = vpop.permute.xlu0 %496  ;;  %v77_v27 = vld [vmem:[%s8460_s1 + $0x1c] sm:$0x3] }
  0xa7   :  { %v756_v49 = vmul.f32 %v642_v36, %v497_v45  ;;  %v147_v51 = vpop.permute.xlu1 %146  ;;  %6401 = vmatpush3.bf16.msra.mxu1 %v6942_v31  ;;  %6406 = vmatprep.subr.bf16.mxu0 %v7073_v5  ;;  %v658_v31 = vrot.slane %v76_v12, %v7235_v42  ;;  %v5850_v45 = vld [vmem:[%s8461_s2 + $0xd] ss:$0 sm:$0xff]  ;;  %v662_v47 = vrot.slane %v77_v27, %v7235_v42 }
  0xa8   :  { %v1150_v53 = vpack.c.bf16 %v1114_v43, %v1114_v43  ;;  %v1079_v54 = vadd.f32 %v5845_v34, %v791_v44  ;;  %v432_v55 = vmul.f32 %v318_v39, %v147_v51  ;;  %6414 = vmatprep.subr.bf16.mxu1 %v7073_v5  ;;  %v334_v34 = vrot.slane %v76_v12, %v7233_v41  ;;  %v6952_v39 = vld [vmem:[%s8459_s3 + $0xd0] sm:$0xff]  }
  0xa9   :  { %6395 = vmatmul.mubr.msk.bf16.vlgmr.msra.gmra.mrb[12].mxu0 %vm1587_vm1, %v1149_v48  ;;  %v338_v51 = vrot.slane %v77_v27, %v7233_v41 }
  0xaa   :  { %v1115_v58 = vmax.f32 %v1079_v54, 0.0  ;;  %v792_v59 = vadd.f32 %v756_v49, %v432_v55  ;;  %6407 = vmatpush3.bf16.msra.mxu0 %v6943_v40  ;;  %6403 = vmatmul.mubr.msk.bf16.vlgmr.msra.gmra.mrb[12].mxu1 %vm1587_vm1, %v1150_v53  ;;  %v501_v60 = vpop.permute.xlu0 %500  ;;  %v78_v40 = vld [vmem:[%s8460_s1 + $0x1e] sm:$0x3] }
  0xab   :  { %v757_v63 = vmul.f32 %v646_v52, %v501_v60  ;;  %v152_v1 = vpop.permute.xlu1 %151  ;;  %6415 = vmatpush3.bf16.msra.mxu1 %v6944_v46  ;;  %6408 = vmatprep.subr.bf16.mxu0 %v7073_v5  ;;  %v6953_v52 = vld [vmem:[%s8459_s3 + $0xc8] sm:$0xff]  }
  0xac   :  { %v1080_v3 = vadd.f32 %v5846_v50, %v792_v59  ;;  %v433_v4 = vmul.f32 %v322_v56, %v152_v1  ;;  %6416 = vmatprep.subr.bf16.mxu1 %v7073_v5  ;;  %6410 = vmatprep.mubr.msk.bf16.mxu0 %vm7074_vm0, %v7073_v5  ;;  %v1151_v13 = vpack.c.bf16 %v1115_v58, %v1115_v58  ;;  %v6954_v56 = vld [vmem:[%s8459_s3 + $0xd8] sm:$0xff]   ;;  %v5851_v59 = vld [vmem:[%s8461_s2 + $0xe] ss:$0 sm:$0xff]  ;;  %v6955_v1 = vld [vmem:[%s8459_s3 + $0xe0] sm:$0xff]  }
  0xad   :  { %6418 = vmatprep.mubr.msk.bf16.mxu1 %vm7074_vm0, %v7073_v5 }
  0xae   :  { %v1116_v8 = vmax.f32 %v1080_v3, 0.0  ;;  %v793_v9 = vadd.f32 %v757_v63, %v433_v4  ;;  %6409 = vmatpush3.bf16.msra.mxu0 %v6945_v57  ;;  %v505_v10 = vpop.permute.xlu0 %504  ;;  %v79_v57 = vld [vmem:[%s8460_s1 + $0x20] sm:$0x3] }
  0xaf   :  { %v758_v14 = vmul.f32 %v650_v2, %v505_v10  ;;  %v157_v16 = vpop.permute.xlu1 %156  ;;  %6417 = vmatpush3.bf16.msra.mxu1 %v6946_v61  ;;  %6422 = vmatprep.subr.bf16.mxu0 %v7073_v5  ;;  %v666_v61 = vrot.slane %v78_v40, %v7235_v42  ;;  %v5852_v10 = vld [vmem:[%s8461_s2 + $0xf] ss:$0 sm:$0xff]  ;;  %v670_v12 = vrot.slane %v79_v57, %v7235_v42 }
  0xb0   :  { %v1152_v18 = vpack.c.bf16 %v1116_v8, %v1116_v8  ;;  %v1081_v19 = vadd.f32 %v5847_v0, %v793_v9  ;;  %v434_v20 = vmul.f32 %v326_v6, %v157_v16  ;;  %6430 = vmatprep.subr.bf16.mxu1 %v7073_v5  ;;  %v342_v0 = vrot.slane %v78_v40, %v7233_v41  ;;  %v6956_v6 = vld [vmem:[%s8459_s3 + $0xf0] sm:$0xff]  }
  0xb1   :  { %6411 = vmatmul.mubr.msk.bf16.vlgmr.msra.gmra.mrb[16].mxu0 %vm1587_vm1, %v1151_v13  ;;  %v346_v16 = vrot.slane %v79_v57, %v7233_v41 }
  0xb2   :  { %v1117_v23 = vmax.f32 %v1081_v19, 0.0  ;;  %v794_v24 = vadd.f32 %v758_v14, %v434_v20  ;;  %6423 = vmatpush3.bf16.msra.mxu0 %v6947_v7  ;;  %6419 = vmatmul.mubr.msk.bf16.vlgmr.msra.gmra.mrb[16].mxu1 %vm1587_vm1, %v1152_v18  ;;  %v509_v25 = vpop.permute.xlu0 %508  ;;  %v80_v7 = vld [vmem:[%s8460_s1 + $0x22] sm:$0x3] }
  0xb3   :  { %v759_v28 = vmul.f32 %v654_v17, %v509_v25  ;;  %v162_v30 = vpop.permute.xlu1 %161  ;;  %6431 = vmatpush3.bf16.msra.mxu1 %v6948_v11  ;;  %6424 = vmatprep.subr.bf16.mxu0 %v7073_v5  ;;  %v6957_v17 = vld [vmem:[%s8459_s3 + $0xe8] sm:$0xff]  }
  0xb4   :  { %v1082_v32 = vadd.f32 %v5848_v15, %v794_v24  ;;  %v435_v33 = vmul.f32 %v330_v21, %v162_v30  ;;  %6432 = vmatprep.subr.bf16.mxu1 %v7073_v5  ;;  %6426 = vmatprep.mubr.msk.bf16.mxu0 %vm7074_vm0, %v7073_v5  ;;  %v1153_v43 = vpack.c.bf16 %v1117_v23, %v1117_v23  ;;  %v6958_v21 = vld [vmem:[%s8459_s3 + $0xf8] sm:$0xff]   ;;  %v5853_v24 = vld [vmem:[%s8461_s2 + $0x10] ss:$0 sm:$0xff]  ;;  %v6959_v30 = vld [vmem:[%s8459_s3 + $0x100] sm:$0xff]  }
  0xb5   :  { %6434 = vmatprep.mubr.msk.bf16.mxu1 %vm7074_vm0, %v7073_v5 }
  0xb6   :  { %v1118_v36 = vmax.f32 %v1082_v32, 0.0  ;;  %v795_v37 = vadd.f32 %v759_v28, %v435_v33  ;;  %6425 = vmatpush3.bf16.msra.mxu0 %v6949_v22  ;;  %v513_v38 = vpop.permute.xlu0 %512  ;;  %v81_v22 = vld [vmem:[%s8460_s1 + $0x24] sm:$0x3] }
  0xb7   :  { %v760_v44 = vmul.f32 %v658_v31, %v513_v38  ;;  %v167_v46 = vpop.permute.xlu1 %166  ;;  %6433 = vmatpush3.bf16.msra.mxu1 %v6950_v26  ;;  %6438 = vmatprep.subr.bf16.mxu0 %v7073_v5  ;;  %v674_v26 = vrot.slane %v80_v7, %v7235_v42  ;;  %v5854_v38 = vld [vmem:[%s8461_s2 + $0x11] ss:$0 sm:$0xff]  ;;  %v678_v40 = vrot.slane %v81_v22, %v7235_v42 }
  0xb8   :  { %v1154_v48 = vpack.c.bf16 %v1118_v36, %v1118_v36  ;;  %v1083_v49 = vadd.f32 %v5849_v29, %v795_v37  ;;  %v436_v50 = vmul.f32 %v334_v34, %v167_v46  ;;  %6446 = vmatprep.subr.bf16.mxu1 %v7073_v5  ;;  %v350_v29 = vrot.slane %v80_v7, %v7233_v41  ;;  %v6960_v34 = vld [vmem:[%s8459_s3 + $0x110] sm:$0xff]  }
  0xb9   :  { %6427 = vmatmul.mubr.msk.bf16.vlgmr.msra.gmra.mrb[20].mxu0 %vm1587_vm1, %v1153_v43  ;;  %v354_v46 = vrot.slane %v81_v22, %v7233_v41 }
  0xba   :  { %v1119_v53 = vmax.f32 %v1083_v49, 0.0  ;;  %v796_v54 = vadd.f32 %v760_v44, %v436_v50  ;;  %6439 = vmatpush3.bf16.msra.mxu0 %v6951_v35  ;;  %6435 = vmatmul.mubr.msk.bf16.vlgmr.msra.gmra.mrb[20].mxu1 %vm1587_vm1, %v1154_v48  ;;  %v517_v55 = vpop.permute.xlu0 %516  ;;  %v82_v35 = vld [vmem:[%s8460_s1 + $0x26] sm:$0x3] }
  0xbb   :  { %v761_v58 = vmul.f32 %v662_v47, %v517_v55  ;;  %v172_v60 = vpop.permute.xlu1 %171  ;;  %6447 = vmatpush3.bf16.msra.mxu1 %v6952_v39  ;;  %6440 = vmatprep.subr.bf16.mxu0 %v7073_v5  ;;  %v6961_v47 = vld [vmem:[%s8459_s3 + $0x108] sm:$0xff]  }
  0xbc   :  { %v1084_v62 = vadd.f32 %v5850_v45, %v796_v54  ;;  %v437_v63 = vmul.f32 %v338_v51, %v172_v60  ;;  %6448 = vmatprep.subr.bf16.mxu1 %v7073_v5  ;;  %6442 = vmatprep.mubr.msk.bf16.mxu0 %vm7074_vm0, %v7073_v5  ;;  %v1155_v8 = vpack.c.bf16 %v1119_v53, %v1119_v53  ;;  %v6962_v51 = vld [vmem:[%s8459_s3 + $0x118] sm:$0xff]   ;;  %v5855_v54 = vld [vmem:[%s8461_s2 + $0x12] ss:$0 sm:$0xff]  ;;  %v6963_v60 = vld [vmem:[%s8459_s3 + $0x120] sm:$0xff]  }
  0xbd   :  { %6450 = vmatprep.mubr.msk.bf16.mxu1 %vm7074_vm0, %v7073_v5 }
  0xbe   :  { %v1120_v2 = vmax.f32 %v1084_v62, 0.0  ;;  %v797_v3 = vadd.f32 %v761_v58, %v437_v63  ;;  %6441 = vmatpush3.bf16.msra.mxu0 %v6953_v52  ;;  %v521_v4 = vpop.permute.xlu0 %520  ;;  %v83_v52 = vld [vmem:[%s8460_s1 + $0x28] sm:$0x3] }
  0xbf   :  { %v762_v9 = vmul.f32 %v666_v61, %v521_v4  ;;  %v177_v11 = vpop.permute.xlu1 %176  ;;  %6449 = vmatpush3.bf16.msra.mxu1 %v6954_v56  ;;  %6454 = vmatprep.subr.bf16.mxu0 %v7073_v5  ;;  %v682_v56 = vrot.slane %v82_v35, %v7235_v42  ;;  %v686_v4 = vrot.slane %v83_v52, %v7235_v42 }
  0xc0   :  { %v1156_v13 = vpack.c.bf16 %v1120_v2, %v1120_v2  ;;  %v1085_v14 = vadd.f32 %v5851_v59, %v797_v3  ;;  %v438_v15 = vmul.f32 %v342_v0, %v177_v11  ;;  %6462 = vmatprep.subr.bf16.mxu1 %v7073_v5  ;;  %v358_v59 = vrot.slane %v82_v35, %v7233_v41  ;;  %v6964_v0 = vld [vmem:[%s8459_s3 + $0x130] sm:$0xff]  }
  0xc1   :  { %6443 = vmatmul.mubr.msk.bf16.vlgmr.msra.gmra.mrb[24].mxu0 %vm1587_vm1, %v1155_v8  ;;  %v5856_v11 = vld [vmem:[%s8461_s2 + $0x13] ss:$0 sm:$0xff] }
  0xc2   :  { %v1121_v18 = vmax.f32 %v1085_v14, 0.0  ;;  %v798_v19 = vadd.f32 %v762_v9, %v438_v15  ;;  %6455 = vmatpush3.bf16.msra.mxu0 %v6955_v1  ;;  %6451 = vmatmul.mubr.msk.bf16.vlgmr.msra.gmra.mrb[24].mxu1 %vm1587_vm1, %v1156_v13  ;;  %v525_v20 = vpop.permute.xlu0 %524  ;;  %v362_v9 = vrot.slane %v83_v52, %v7233_v41  ;;  %v6965_v14 = vld [vmem:[%s8459_s3 + $0x128] sm:$0xff]  }
  0xc3   :  { %v763_v23 = vmul.f32 %v670_v12, %v525_v20  ;;  %v182_v25 = vpop.permute.xlu1 %181  ;;  %6463 = vmatpush3.bf16.msra.mxu1 %v6956_v6  ;;  %6456 = vmatprep.subr.bf16.mxu0 %v7073_v5 }
  0xc4   :  { %v1086_v27 = vadd.f32 %v5852_v10, %v798_v19  ;;  %v439_v28 = vmul.f32 %v346_v16, %v182_v25  ;;  %6464 = vmatprep.subr.bf16.mxu1 %v7073_v5  ;;  %6458 = vmatprep.mubr.msk.bf16.mxu0 %vm7074_vm0, %v7073_v5  ;;  %v1157_v36 = vpack.c.bf16 %v1121_v18, %v1121_v18  ;;  %v84_v10 = vld [vmem:[%s8460_s1 + $0x2a] sm:$0x3]  ;;  %v6966_v19 = vld [vmem:[%s8459_s3 + $0x138] sm:$0xff]  }
  0xc5   :  { %6466 = vmatprep.mubr.msk.bf16.mxu1 %vm7074_vm0, %v7073_v5  ;;  %v690_v18 = vrot.slane %v84_v10, %v7235_v42  ;;  %v366_v22 = vrot.slane %v84_v10, %v7233_v41 }
  0xc6   :  { %v1122_v31 = vmax.f32 %v1086_v27, 0.0  ;;  %v799_v32 = vadd.f32 %v763_v23, %v439_v28  ;;  %6457 = vmatpush3.bf16.msra.mxu0 %v6957_v17  ;;  %v529_v33 = vpop.permute.xlu0 %528  ;;  %v85_v23 = vld [vmem:[%s8460_s1 + $0x2c] sm:$0x3]  ;;  %v6967_v28 = vld [vmem:[%s8459_s3 + $0x140] sm:$0xff]  }
  0xc7   :  { %v764_v37 = vmul.f32 %v674_v26, %v529_v33  ;;  %v187_v39 = vpop.permute.xlu1 %186  ;;  %6465 = vmatpush3.bf16.msra.mxu1 %v6958_v21  ;;  %6470 = vmatprep.subr.bf16.mxu0 %v7073_v5  ;;  %v6968_v33 = vld [vmem:[%s8459_s3 + $0x150] sm:$0xff]  }
  0xc8   :  { %v1158_v43 = vpack.c.bf16 %v1122_v31, %v1122_v31  ;;  %v1087_v44 = vadd.f32 %v5853_v24, %v799_v32  ;;  %v440_v45 = vmul.f32 %v350_v29, %v187_v39  ;;  %6478 = vmatprep.subr.bf16.mxu1 %v7073_v5  ;;  %v5857_v24 = vld [vmem:[%s8461_s2 + $0x14] ss:$0 sm:$0xff]  ;;  %v694_v32 = vrot.slane %v85_v23, %v7235_v42  ;;  %v5858_v39 = vld [vmem:[%s8461_s2 + $0x15] ss:$0 sm:$0xff] }
  0xc9   :  { %6459 = vmatmul.mubr.msk.bf16.vlgmr.msra.gmra.mrb[28].mxu0 %vm1587_vm1, %v1157_v36 }
  0xca   :  { %v1123_v48 = vmax.f32 %v1087_v44, 0.0  ;;  %v800_v49 = vadd.f32 %v764_v37, %v440_v45  ;;  %6471 = vmatpush3.bf16.msra.mxu0 %v6959_v30  ;;  %6467 = vmatmul.mubr.msk.bf16.vlgmr.msra.gmra.mrb[28].mxu1 %vm1587_vm1, %v1158_v43  ;;  %v533_v50 = vpop.permute.xlu0 %532  ;;  %v370_v37 = vrot.slane %v85_v23, %v7233_v41  ;;  %v6969_v44 = vld [vmem:[%s8459_s3 + $0x148] sm:$0xff]   ;;  %v6975_v23 = vld [vmem:[%s8459_s3 + $0x180] sm:$0xff]  }
  0xcb   :  { %v765_v53 = vmul.f32 %v678_v40, %v533_v50  ;;  %v192_v55 = vpop.permute.xlu1 %191  ;;  %6479 = vmatpush3.bf16.msra.mxu1 %v6960_v34  ;;  %6472 = vmatprep.subr.bf16.mxu0 %v7073_v5 }
  0xcc   :  { %v1088_v57 = vadd.f32 %v5854_v38, %v800_v49  ;;  %v441_v58 = vmul.f32 %v354_v46, %v192_v55  ;;  %6480 = vmatprep.subr.bf16.mxu1 %v7073_v5  ;;  %6474 = vmatprep.mubr.msk.bf16.mxu0 %vm7074_vm0, %v7073_v5  ;;  %v1159_v1 = vpack.c.bf16 %v1123_v48, %v1123_v48  ;;  %v86_v38 = vld [vmem:[%s8460_s1 + $0x2e] sm:$0x3]  ;;  %v6970_v49 = vld [vmem:[%s8459_s3 + $0x158] sm:$0xff]  }
  0xcd   :  { %6482 = vmatprep.mubr.msk.bf16.mxu1 %vm7074_vm0, %v7073_v5  ;;  %v698_v48 = vrot.slane %v86_v38, %v7235_v42  ;;  %v374_v52 = vrot.slane %v86_v38, %v7233_v41 }
  0xce   :  { %v1124_v61 = vmax.f32 %v1088_v57, 0.0  ;;  %v801_v62 = vadd.f32 %v765_v53, %v441_v58  ;;  %6473 = vmatpush3.bf16.msra.mxu0 %v6961_v47  ;;  %v537_v63 = vpop.permute.xlu0 %536  ;;  %v87_v53 = vld [vmem:[%s8460_s1 + $0x30] sm:$0x3]  ;;  %v6971_v58 = vld [vmem:[%s8459_s3 + $0x160] sm:$0xff]  }
  0xcf   :  { %v766_v2 = vmul.f32 %v682_v56, %v537_v63  ;;  %v197_v3 = vpop.permute.xlu1 %196  ;;  %6481 = vmatpush3.bf16.msra.mxu1 %v6962_v51  ;;  %6486 = vmatprep.subr.bf16.mxu0 %v7073_v5  ;;  %v6972_v63 = vld [vmem:[%s8459_s3 + $0x170] sm:$0xff]  }
  0xd0   :  { %v1160_v6 = vpack.c.bf16 %v1124_v61, %v1124_v61  ;;  %v1089_v7 = vadd.f32 %v5855_v54, %v801_v62  ;;  %v442_v8 = vmul.f32 %v358_v59, %v197_v3  ;;  %6494 = vmatprep.subr.bf16.mxu1 %v7073_v5  ;;  %v5859_v54 = vld [vmem:[%s8461_s2 + $0x16] ss:$0 sm:$0xff]  ;;  %v702_v62 = vrot.slane %v87_v53, %v7235_v42 }
  0xd1   :  { %6475 = vmatmul.mubr.msk.bf16.vlgmr.msra.gmra.mrb[32].mxu0 %vm1587_vm1, %v1159_v1  ;;  %v378_v3 = vrot.slane %v87_v53, %v7233_v41  ;;  %v6979_v53 = vld [vmem:[%s8459_s3 + $0x1a0] sm:$0xff]  }
  0xd2   :  { %v802_v12 = vadd.f32 %v766_v2, %v442_v8  ;;  %6487 = vmatpush3.bf16.msra.mxu0 %v6963_v60  ;;  %6483 = vmatmul.mubr.msk.bf16.vlgmr.msra.gmra.mrb[32].mxu1 %vm1587_vm1, %v1160_v6  ;;  %v541_v13 = vpop.permute.xlu0 %540  ;;  %v1125_v15 = vmax.f32 %v1089_v7, 0.0  ;;  %v5860_v6 = vld [vmem:[%s8461_s2 + $0x17] ss:$0 sm:$0xff] }
  0xd3   :  { %v767_v16 = vmul.f32 %v686_v4, %v541_v13  ;;  %v202_v17 = vpop.permute.xlu1 %201  ;;  %6495 = vmatpush3.bf16.msra.mxu1 %v6964_v0  ;;  %6488 = vmatprep.subr.bf16.mxu0 %v7073_v5  ;;  %v88_v4 = vld [vmem:[%s8460_s1 + $0x32] sm:$0x3] }
  0xd4   :  { %v1090_v20 = vadd.f32 %v5856_v11, %v802_v12  ;;  %v443_v21 = vmul.f32 %v362_v9, %v202_v17  ;;  %6496 = vmatprep.subr.bf16.mxu1 %v7073_v5  ;;  %6490 = vmatprep.mubr.msk.bf16.mxu0 %vm7074_vm0, %v7073_v5  ;;  %v1161_v29 = vpack.c.bf16 %v1125_v15, %v1125_v15  ;;  %v6973_v9 = vld [vmem:[%s8459_s3 + $0x168] sm:$0xff]  }
  0xd5   :  { %6498 = vmatprep.mubr.msk.bf16.mxu1 %vm7074_vm0, %v7073_v5  ;;  %v706_v13 = vrot.slane %v88_v4, %v7235_v42  ;;  %v382_v17 = vrot.slane %v88_v4, %v7233_v41 }
  0xd6   :  { %v1126_v25 = vmax.f32 %v1090_v20, 0.0  ;;  %v803_v26 = vadd.f32 %v767_v16, %v443_v21  ;;  %6489 = vmatpush3.bf16.msra.mxu0 %v6965_v14  ;;  %v545_v27 = vpop.permute.xlu0 %544  ;;  %v6974_v14 = vld [vmem:[%s8459_s3 + $0x178] sm:$0xff]  }
  0xd7   :  { %v768_v30 = vmul.f32 %v690_v18, %v545_v27  ;;  %v207_v31 = vpop.permute.xlu1 %206  ;;  %6497 = vmatpush3.bf16.msra.mxu1 %v6966_v19  ;;  %6502 = vmatprep.subr.bf16.mxu0 %v7073_v5  ;;  %v89_v18 = vld [vmem:[%s8460_s1 + $0x34] sm:$0x3]  ;;  %v5861_v19 = vld [vmem:[%s8461_s2 + $0x18] ss:$0 sm:$0xff] }
  0xd8   :  { %v1162_v34 = vpack.c.bf16 %v1126_v25, %v1126_v25  ;;  %v1091_v35 = vadd.f32 %v5857_v24, %v803_v26  ;;  %v444_v36 = vmul.f32 %v366_v22, %v207_v31  ;;  %6510 = vmatprep.subr.bf16.mxu1 %v7073_v5  ;;  %v710_v27 = vrot.slane %v89_v18, %v7235_v42 }
  0xd9   :  { %6491 = vmatmul.mubr.msk.bf16.vlgmr.msra.gmra.mrb[36].mxu0 %vm1587_vm1, %v1161_v29 }
  0xda   :  { %v804_v40 = vadd.f32 %v768_v30, %v444_v36  ;;  %6503 = vmatpush3.bf16.msra.mxu0 %v6967_v28  ;;  %6499 = vmatmul.mubr.msk.bf16.vlgmr.msra.gmra.mrb[36].mxu1 %vm1587_vm1, %v1162_v34  ;;  %v549_v43 = vpop.permute.xlu0 %548  ;;  %v1127_v45 = vmax.f32 %v1091_v35, 0.0  ;;  %v6976_v28 = vld [vmem:[%s8459_s3 + $0x190] sm:$0xff]   ;;  %v5862_v34 = vld [vmem:[%s8461_s2 + $0x19] ss:$0 sm:$0xff] }
  0xdb   :  { %v769_v46 = vmul.f32 %v694_v32, %v549_v43  ;;  %v212_v47 = vpop.permute.xlu1 %211  ;;  %6511 = vmatpush3.bf16.msra.mxu1 %v6968_v33  ;;  %6504 = vmatprep.subr.bf16.mxu0 %v7073_v5  ;;  %v386_v32 = vrot.slane %v89_v18, %v7233_v41  ;;  %v90_v33 = vld [vmem:[%s8460_s1 + $0x36] sm:$0x3]  ;;  %v6983_v18 = vld [vmem:[%s8459_s3 + $0x1c0] sm:$0xff]  }
  0xdc   :  { %v1092_v50 = vadd.f32 %v5858_v39, %v804_v40  ;;  %v445_v51 = vmul.f32 %v370_v37, %v212_v47  ;;  %6512 = vmatprep.subr.bf16.mxu1 %v7073_v5  ;;  %6506 = vmatprep.mubr.msk.bf16.mxu0 %vm7074_vm0, %v7073_v5  ;;  %v1163_v59 = vpack.c.bf16 %v1127_v45, %v1127_v45  ;;  %v6977_v37 = vld [vmem:[%s8459_s3 + $0x188] sm:$0xff]  }
  0xdd   :  { %6514 = vmatprep.mubr.msk.bf16.mxu1 %vm7074_vm0, %v7073_v5  ;;  %v714_v43 = vrot.slane %v90_v33, %v7235_v42  ;;  %v390_v47 = vrot.slane %v90_v33, %v7233_v41 }
  0xde   :  { %v1128_v55 = vmax.f32 %v1092_v50, 0.0  ;;  %v805_v56 = vadd.f32 %v769_v46, %v445_v51  ;;  %6505 = vmatpush3.bf16.msra.mxu0 %v6969_v44  ;;  %v553_v57 = vpop.permute.xlu0 %552  ;;  %v6978_v44 = vld [vmem:[%s8459_s3 + $0x198] sm:$0xff]  }
  0xdf   :  { %v770_v60 = vmul.f32 %v698_v48, %v553_v57  ;;  %v217_v61 = vpop.permute.xlu1 %216  ;;  %6513 = vmatpush3.bf16.msra.mxu1 %v6970_v49  ;;  %6518 = vmatprep.subr.bf16.mxu0 %v7073_v5  ;;  %v91_v48 = vld [vmem:[%s8460_s1 + $0x38] sm:$0x3]  ;;  %v5863_v49 = vld [vmem:[%s8461_s2 + $0x1a] ss:$0 sm:$0xff] }
  0xe0   :  { %v1164_v0 = vpack.c.bf16 %v1128_v55, %v1128_v55  ;;  %v1093_v1 = vadd.f32 %v5859_v54, %v805_v56  ;;  %v446_v2 = vmul.f32 %v374_v52, %v217_v61  ;;  %6526 = vmatprep.subr.bf16.mxu1 %v7073_v5  ;;  %v718_v57 = vrot.slane %v91_v48, %v7235_v42 }
  0xe1   :  { %6507 = vmatmul.mubr.msk.bf16.vlgmr.msra.gmra.mrb[40].mxu0 %vm1587_vm1, %v1163_v59 }
  0xe2   :  { %v806_v7 = vadd.f32 %v770_v60, %v446_v2  ;;  %6519 = vmatpush3.bf16.msra.mxu0 %v6971_v58  ;;  %6515 = vmatmul.mubr.msk.bf16.vlgmr.msra.gmra.mrb[40].mxu1 %vm1587_vm1, %v1164_v0  ;;  %v557_v8 = vpop.permute.xlu0 %556  ;;  %v1129_v10 = vmax.f32 %v1093_v1, 0.0  ;;  %v6980_v58 = vld [vmem:[%s8459_s3 + $0x1b0] sm:$0xff]   ;;  %v5864_v0 = vld [vmem:[%s8461_s2 + $0x1b] ss:$0 sm:$0xff] }
  0xe3   :  { %v771_v11 = vmul.f32 %v702_v62, %v557_v8  ;;  %v222_v12 = vpop.permute.xlu1 %221  ;;  %6527 = vmatpush3.bf16.msra.mxu1 %v6972_v63  ;;  %6520 = vmatprep.subr.bf16.mxu0 %v7073_v5  ;;  %v394_v62 = vrot.slane %v91_v48, %v7233_v41  ;;  %v92_v63 = vld [vmem:[%s8460_s1 + $0x3a] sm:$0x3]  ;;  %v6987_v48 = vld [vmem:[%s8459_s3 + $0x1e0] sm:$0xff]  }
  0xe4   :  { %v1094_v15 = vadd.f32 %v5860_v6, %v806_v7  ;;  %v447_v16 = vmul.f32 %v378_v3, %v222_v12  ;;  %6528 = vmatprep.subr.bf16.mxu1 %v7073_v5  ;;  %6522 = vmatprep.mubr.msk.bf16.mxu0 %vm7074_vm0, %v7073_v5  ;;  %v1165_v24 = vpack.c.bf16 %v1129_v10, %v1129_v10  ;;  %v6981_v3 = vld [vmem:[%s8459_s3 + $0x1a8] sm:$0xff]  }
  0xe5   :  { %6530 = vmatprep.mubr.msk.bf16.mxu1 %vm7074_vm0, %v7073_v5  ;;  %v722_v8 = vrot.slane %v92_v63, %v7235_v42  ;;  %v398_v12 = vrot.slane %v92_v63, %v7233_v41 }
  0xe6   :  { %v1130_v20 = vmax.f32 %v1094_v15, 0.0  ;;  %v807_v21 = vadd.f32 %v771_v11, %v447_v16  ;;  %6521 = vmatpush3.bf16.msra.mxu0 %v6973_v9  ;;  %v561_v22 = vpop.permute.xlu0 %560  ;;  %v6982_v9 = vld [vmem:[%s8459_s3 + $0x1b8] sm:$0xff]  }
  0xe7   :  { %v772_v25 = vmul.f32 %v706_v13, %v561_v22  ;;  %v227_v26 = vpop.permute.xlu1 %226  ;;  %6529 = vmatpush3.bf16.msra.mxu1 %v6974_v14  ;;  %6534 = vmatprep.subr.bf16.mxu0 %v7073_v5  ;;  %v93_v13 = vld [vmem:[%s8460_s1 + $0x3c] sm:$0x3] }
  0xe8   :  { %v1166_v29 = vpack.c.bf16 %v1130_v20, %v1130_v20  ;;  %v1095_v30 = vadd.f32 %v5861_v19, %v807_v21  ;;  %v448_v31 = vmul.f32 %v382_v17, %v227_v26  ;;  %6542 = vmatprep.subr.bf16.mxu1 %v7073_v5  ;;  %v5865_v14 = vld [vmem:[%s8461_s2 + $0x1c] ss:$0 sm:$0xff]  ;;  %v726_v22 = vrot.slane %v93_v13, %v7235_v42 }
  0xe9   :  { %6523 = vmatmul.mubr.msk.bf16.vlgmr.msra.gmra.mrb[44].mxu0 %vm1587_vm1, %v1165_v24 }
  0xea   :  { %v808_v35 = vadd.f32 %v772_v25, %v448_v31  ;;  %6535 = vmatpush3.bf16.msra.mxu0 %v6975_v23  ;;  %6531 = vmatmul.mubr.msk.bf16.vlgmr.msra.gmra.mrb[44].mxu1 %vm1587_vm1, %v1166_v29  ;;  %v565_v36 = vpop.permute.xlu0 %564  ;;  %v1131_v38 = vmax.f32 %v1095_v30, 0.0  ;;  %v6984_v23 = vld [vmem:[%s8459_s3 + $0x1d0] sm:$0xff]   ;;  %v5866_v29 = vld [vmem:[%s8461_s2 + $0x1d] ss:$0 sm:$0xff] }
  0xeb   :  { %v773_v39 = vmul.f32 %v710_v27, %v565_v36  ;;  %v232_v40 = vpop.permute.xlu1 %231  ;;  %6543 = vmatpush3.bf16.msra.mxu1 %v6976_v28  ;;  %6536 = vmatprep.subr.bf16.mxu0 %v7073_v5  ;;  %v402_v27 = vrot.slane %v93_v13, %v7233_v41  ;;  %v94_v28 = vld [vmem:[%s8460_s1 + $0x3e] sm:$0x3]  ;;  %v6991_v13 = vld [vmem:[%s8459_s3 + $0x200] sm:$0xff]  }
  0xec   :  { %v1096_v45 = vadd.f32 %v5862_v34, %v808_v35  ;;  %v449_v46 = vmul.f32 %v386_v32, %v232_v40  ;;  %6544 = vmatprep.subr.bf16.mxu1 %v7073_v5  ;;  %6538 = vmatprep.mubr.msk.bf16.mxu0 %vm7074_vm0, %v7073_v5  ;;  %v1167_v54 = vpack.c.bf16 %v1131_v38, %v1131_v38  ;;  %v6985_v32 = vld [vmem:[%s8459_s3 + $0x1c8] sm:$0xff]  }
  0xed   :  { %6546 = vmatprep.mubr.msk.bf16.mxu1 %vm7074_vm0, %v7073_v5  ;;  %v730_v36 = vrot.slane %v94_v28, %v7235_v42  ;;  %v406_v40 = vrot.slane %v94_v28, %v7233_v41 }
  0xee   :  { %v1132_v50 = vmax.f32 %v1096_v45, 0.0  ;;  %v809_v51 = vadd.f32 %v773_v39, %v449_v46  ;;  %6537 = vmatpush3.bf16.msra.mxu0 %v6977_v37  ;;  %v569_v52 = vpop.permute.xlu0 %568  ;;  %v6986_v37 = vld [vmem:[%s8459_s3 + $0x1d8] sm:$0xff]  }
  0xef   :  { %v774_v55 = vmul.f32 %v714_v43, %v569_v52  ;;  %v237_v56 = vpop.permute.xlu1 %236  ;;  %6545 = vmatpush3.bf16.msra.mxu1 %v6978_v44  ;;  %6550 = vmatprep.subr.bf16.mxu0 %v7073_v5  ;;  %v95_v43 = vld [vmem:[%s8460_s1 + $0x40] sm:$0x3]  ;;  %v5867_v44 = vld [vmem:[%s8461_s2 + $0x1e] ss:$0 sm:$0xff] }
  0xf0   :  { %v1168_v59 = vpack.c.bf16 %v1132_v50, %v1132_v50  ;;  %v1097_v60 = vadd.f32 %v5863_v49, %v809_v51  ;;  %v450_v61 = vmul.f32 %v390_v47, %v237_v56  ;;  %6558 = vmatprep.subr.bf16.mxu1 %v7073_v5  ;;  %v734_v52 = vrot.slane %v95_v43, %v7235_v42 }
  0xf1   :  { %6539 = vmatmul.mubr.msk.bf16.vlgmr.msra.gmra.mrb[48].mxu0 %vm1587_vm1, %v1167_v54 }
  0xf2   :  { %v810_v1 = vadd.f32 %v774_v55, %v450_v61  ;;  %6551 = vmatpush3.bf16.msra.mxu0 %v6979_v53  ;;  %6547 = vmatmul.mubr.msk.bf16.vlgmr.msra.gmra.mrb[48].mxu1 %vm1587_vm1, %v1168_v59  ;;  %v573_v2 = vpop.permute.xlu0 %572  ;;  %v1133_v4 = vmax.f32 %v1097_v60, 0.0  ;;  %v6988_v53 = vld [vmem:[%s8459_s3 + $0x1f0] sm:$0xff]   ;;  %v5868_v59 = vld [vmem:[%s8461_s2 + $0x1f] ss:$0 sm:$0xff] }
  0xf3   :  { %v775_v6 = vmul.f32 %v718_v57, %v573_v2  ;;  %v242_v7 = vpop.permute.xlu1 %241  ;;  %6559 = vmatpush3.bf16.msra.mxu1 %v6980_v58  ;;  %6552 = vmatprep.subr.bf16.mxu0 %v7073_v5  ;;  %v410_v57 = vrot.slane %v95_v43, %v7233_v41  ;;  %v96_v58 = vld [vmem:[%s8460_s1 + $0x42] sm:$0x3] }
  0xf4   :  { %v1098_v10 = vadd.f32 %v5864_v0, %v810_v1  ;;  %v451_v11 = vmul.f32 %v394_v62, %v242_v7  ;;  %6560 = vmatprep.subr.bf16.mxu1 %v7073_v5  ;;  %6554 = vmatprep.mubr.msk.bf16.mxu0 %vm7074_vm0, %v7073_v5  ;;  %v1169_v19 = vpack.c.bf16 %v1133_v4, %v1133_v4  ;;  %v6989_v62 = vld [vmem:[%s8459_s3 + $0x1e8] sm:$0xff]  }
  0xf5   :  { %6562 = vmatprep.mubr.msk.bf16.mxu1 %vm7074_vm0, %v7073_v5  ;;  %v738_v2 = vrot.slane %v96_v58, %v7235_v42  ;;  %v414_v7 = vrot.slane %v96_v58, %v7233_v41 }
  0xf6   :  { %v1134_v15 = vmax.f32 %v1098_v10, 0.0  ;;  %v811_v16 = vadd.f32 %v775_v6, %v451_v11  ;;  %6553 = vmatpush3.bf16.msra.mxu0 %v6981_v3  ;;  %v577_v17 = vpop.permute.xlu0 %576  ;;  %v6990_v3 = vld [vmem:[%s8459_s3 + $0x1f8] sm:$0xff]  }
  0xf7   :  { %v776_v20 = vmul.f32 %v722_v8, %v577_v17  ;;  %v247_v21 = vpop.permute.xlu1 %246  ;;  %6561 = vmatpush3.bf16.msra.mxu1 %v6982_v9  ;;  %6566 = vmatprep.subr.bf16.mxu0 %v7073_v5  ;;  %v97_v8 = vld [vmem:[%s8460_s1 + $0x44] sm:$0x3]  ;;  %v5869_v9 = vld [vmem:[%s8461_s2 + $0x20] ss:$0 sm:$0xff] }
  0xf8   :  { %v1170_v24 = vpack.c.bf16 %v1134_v15, %v1134_v15  ;;  %v1099_v25 = vadd.f32 %v5865_v14, %v811_v16  ;;  %v452_v26 = vmul.f32 %v398_v12, %v247_v21  ;;  %6574 = vmatprep.subr.bf16.mxu1 %v7073_v5  ;;  %v742_v17 = vrot.slane %v97_v8, %v7235_v42 }
  0xf9   :  { %6555 = vmatmul.mubr.msk.bf16.vlgmr.msra.gmra.mrb[52].mxu0 %vm1587_vm1, %v1169_v19 }
  0xfa   :  { %v812_v30 = vadd.f32 %v776_v20, %v452_v26  ;;  %6567 = vmatpush3.bf16.msra.mxu0 %v6983_v18  ;;  %6563 = vmatmul.mubr.msk.bf16.vlgmr.msra.gmra.mrb[52].mxu1 %vm1587_vm1, %v1170_v24  ;;  %v581_v31 = vpop.permute.xlu0 %580  ;;  %v1135_v33 = vmax.f32 %v1099_v25, 0.0  ;;  %v6992_v18 = vld [vmem:[%s8459_s3 + $0x210] sm:$0xff]   ;;  %v5870_v24 = vld [vmem:[%s8461_s2 + $0x21] ss:$0 sm:$0xff] }
  0xfb   :  { %v777_v34 = vmul.f32 %v726_v22, %v581_v31  ;;  %v252_v35 = vpop.permute.xlu1 %251  ;;  %6575 = vmatpush3.bf16.msra.mxu1 %v6984_v23  ;;  %6568 = vmatprep.subr.bf16.mxu0 %v7073_v5  ;;  %v418_v22 = vrot.slane %v97_v8, %v7233_v41  ;;  %v98_v23 = vld [vmem:[%s8460_s1 + $0x46] sm:$0x3] }
  0xfc   :  { %v1100_v38 = vadd.f32 %v5866_v29, %v812_v30  ;;  %v453_v39 = vmul.f32 %v402_v27, %v252_v35  ;;  %6576 = vmatprep.subr.bf16.mxu1 %v7073_v5  ;;  %6570 = vmatprep.mubr.msk.bf16.mxu0 %vm7074_vm0, %v7073_v5  ;;  %v1171_v49 = vpack.c.bf16 %v1135_v33, %v1135_v33  ;;  %v6993_v27 = vld [vmem:[%s8459_s3 + $0x208] sm:$0xff]  }
  0xfd   :  { %6578 = vmatprep.mubr.msk.bf16.mxu1 %vm7074_vm0, %v7073_v5  ;;  %v746_v31 = vrot.slane %v98_v23, %v7235_v42  ;;  %v422_v35 = vrot.slane %v98_v23, %v7233_v41 }
  0xfe   :  { %v1136_v45 = vmax.f32 %v1100_v38, 0.0  ;;  %v813_v46 = vadd.f32 %v777_v34, %v453_v39  ;;  %6569 = vmatpush3.bf16.msra.mxu0 %v6985_v32  ;;  %v585_v47 = vpop.permute.xlu0 %584  ;;  %v6994_v32 = vld [vmem:[%s8459_s3 + $0x218] sm:$0xff]   ;;  %v6995_v39 = vld [vmem:[%s8459_s3 + $0x220] sm:$0xff]  }
  0xff   :  { %v778_v50 = vmul.f32 %v730_v36, %v585_v47  ;;  %v257_v51 = vpop.permute.xlu1 %256  ;;  %6577 = vmatpush3.bf16.msra.mxu1 %v6986_v37  ;;  %6582 = vmatprep.subr.bf16.mxu0 %v7073_v5  ;;  %v5871_v36 = vld [vmem:[%s8461_s2 + $0x22] ss:$0 sm:$0xff] }
 0x100   :  { %v1172_v54 = vpack.c.bf16 %v1136_v45, %v1136_v45  ;;  %v1101_v55 = vadd.f32 %v5867_v44, %v813_v46  ;;  %v454_v56 = vmul.f32 %v406_v40, %v257_v51  ;;  %6590 = vmatprep.subr.bf16.mxu1 %v7073_v5  ;;  %v6996_v44 = vld [vmem:[%s8459_s3 + $0x230] sm:$0xff]  }
 0x101   :  { %6571 = vmatmul.mubr.msk.bf16.vlgmr.msra.gmra.mrb[56].mxu0 %vm1587_vm1, %v1171_v49 }
 0x102   :  { %v814_v60 = vadd.f32 %v778_v50, %v454_v56  ;;  %6583 = vmatpush3.bf16.msra.mxu0 %v6987_v48  ;;  %6579 = vmatmul.mubr.msk.bf16.vlgmr.msra.gmra.mrb[56].mxu1 %vm1587_vm1, %v1172_v54  ;;  %v589_v61 = vpop.permute.xlu0 %588  ;;  %v1137_v63 = vmax.f32 %v1101_v55, 0.0  ;;  %v5872_v48 = vld [vmem:[%s8461_s2 + $0x23] ss:$0 sm:$0xff]  ;;  %v6997_v50 = vld [vmem:[%s8459_s3 + $0x228] sm:$0xff]  }
 0x103   :  { %v779_v0 = vmul.f32 %v734_v52, %v589_v61  ;;  %v262_v1 = vpop.permute.xlu1 %261  ;;  %6591 = vmatpush3.bf16.msra.mxu1 %v6988_v53  ;;  %6584 = vmatprep.subr.bf16.mxu0 %v7073_v5  ;;  %v6998_v52 = vld [vmem:[%s8459_s3 + $0x238] sm:$0xff]   ;;  %v6999_v55 = vld [vmem:[%s8462_s5] sm:$0xff]  }
 0x104   :  { %v1102_v4 = vadd.f32 %v5868_v59, %v814_v60  ;;  %v455_v6 = vmul.f32 %v410_v57, %v262_v1  ;;  %6592 = vmatprep.subr.bf16.mxu1 %v7073_v5  ;;  %6586 = vmatprep.mubr.msk.bf16.mxu0 %vm7074_vm0, %v7073_v5  ;;  %v1173_v14 = vpack.c.bf16 %v1137_v63, %v1137_v63  ;;  %v7000_v57 = vld [vmem:[%s8462_s5 + $0x10] sm:$0xff]   ;;  %v7001_v59 = vld [vmem:[%s8462_s5 + $0x8] sm:$0xff]   ;;  %v7002_v60 = vld [vmem:[%s8462_s5 + $0x18] sm:$0xff]  }
 0x105   :  { %6594 = vmatprep.mubr.msk.bf16.mxu1 %vm7074_vm0, %v7073_v5  ;;  %v5873_v61 = vld [vmem:[%s8463_s4] ss:$0 sm:$0xff] }
 0x106   :  { %v1138_v10 = vmax.f32 %v1102_v4, 0.0  ;;  %v815_v11 = vadd.f32 %v779_v0, %v455_v6  ;;  %6585 = vmatpush3.bf16.msra.mxu0 %v6989_v62  ;;  %v593_v12 = vpop.permute.xlu0 %592  ;;  %v5874_v62 = vld [vmem:[%s8463_s4 + $0x1] ss:$0 sm:$0xff] }
 0x107   :  { %v780_v15 = vmul.f32 %v738_v2, %v593_v12  ;;  %v267_v16 = vpop.permute.xlu1 %266  ;;  %6593 = vmatpush3.bf16.msra.mxu1 %v6990_v3  ;;  %6598 = vmatprep.subr.bf16.mxu0 %v7073_v5  ;;  %v7003_v12 = vld [vmem:[%s8462_s5 + $0x20] sm:$0xff]  }
 0x108   :  { %v1174_v19 = vpack.c.bf16 %v1138_v10, %v1138_v10  ;;  %v1103_v20 = vadd.f32 %v5869_v9, %v815_v11  ;;  %v456_v21 = vmul.f32 %v414_v7, %v267_v16  ;;  %6606 = vmatprep.subr.bf16.mxu1 %v7073_v5  ;;  %v5875_v16 = vld [vmem:[%s8463_s4 + $0x2] ss:$0 sm:$0xff] }
 0x109   :  { %6587 = vmatmul.mubr.msk.bf16.vlgmr.msra.gmra.mrb[60].mxu0 %vm1587_vm1, %v1173_v14 }
 0x10a   :  { %v816_v25 = vadd.f32 %v780_v15, %v456_v21  ;;  %6599 = vmatpush3.bf16.msra.mxu0 %v6991_v13  ;;  %6595 = vmatmul.mubr.msk.bf16.vlgmr.msra.gmra.mrb[60].mxu1 %vm1587_vm1, %v1174_v19  ;;  %v597_v26 = vpop.permute.xlu0 %596  ;;  %v1139_v28 = vmax.f32 %v1103_v20, 0.0  ;;  %v7004_v13 = vld [vmem:[%s8462_s5 + $0x30] sm:$0xff]   ;;  %v7005_v19 = vld [vmem:[%s8462_s5 + $0x28] sm:$0xff]   ;;  %v7006_v20 = vld [vmem:[%s8462_s5 + $0x38] sm:$0xff]  }
 0x10b   :  { %v781_v29 = vmul.f32 %v742_v17, %v597_v26  ;;  %v272_v30 = vpop.permute.xlu1 %271  ;;  %6607 = vmatpush3.bf16.msra.mxu1 %v6992_v18  ;;  %6600 = vmatprep.subr.bf16.mxu0 %v7073_v5  ;;  %v5876_v17 = vld [vmem:[%s8463_s4 + $0x3] ss:$0 sm:$0xff] }
 0x10c   :  { %v1104_v33 = vadd.f32 %v5870_v24, %v816_v25  ;;  %v457_v34 = vmul.f32 %v418_v22, %v272_v30  ;;  %6608 = vmatprep.subr.bf16.mxu1 %v7073_v5  ;;  %6602 = vmatprep.mubr.msk.bf16.mxu0 %vm7074_vm0, %v7073_v5  ;;  %v1175_v40 = vpack.c.bf16 %v1139_v28, %v1139_v28 }
 0x10d   :  { %6610 = vmatprep.mubr.msk.bf16.mxu1 %vm7074_vm0, %v7073_v5 }
 0x10e   :  { %v1140_v42 = vmax.f32 %v1104_v33, 0.0  ;;  %v817_v37 = vadd.f32 %v781_v29, %v457_v34  ;;  %6601 = vmatpush3.bf16.msra.mxu0 %v6993_v27  ;;  %v601_v38 = vpop.permute.xlu0 %600  ;;  %v7008_v34 = vld [vmem:[%s8462_s5 + $0x50] sm:$0xff]  }
 0x10f   :  { %v782_v41 = vmul.f32 %v746_v31, %v601_v38  ;;  %v277_v43 = vpop.permute.xlu1 %276  ;;  %6609 = vmatpush3.bf16.msra.mxu1 %v6994_v32  ;;  %6614 = vmatprep.subr.bf16.mxu0 %v7073_v5  ;;  %v7007_v32 = vld [vmem:[%s8462_s5 + $0x40] sm:$0xff]   ;;  %v7009_v38 = vld [vmem:[%s8462_s5 + $0x48] sm:$0xff]  }
 0x110   :  { %v1176_v45 = vpack.c.bf16 %v1140_v42, %v1140_v42  ;;  %v1105_v46 = vadd.f32 %v5871_v36, %v817_v37  ;;  %v458_v47 = vmul.f32 %v422_v35, %v277_v43  ;;  %6622 = vmatprep.subr.bf16.mxu1 %v7073_v5  ;;  %v5877_v36 = vld [vmem:[%s8463_s4 + $0x4] ss:$0 sm:$0xff]  ;;  %v5878_v42 = vld [vmem:[%s8463_s4 + $0x5] ss:$0 sm:$0xff]  ;;  %v7010_v43 = vld [vmem:[%s8462_s5 + $0x58] sm:$0xff]  }
 0x111   :  { %6603 = vmatmul.mubr.msk.bf16.vlgmr.msra.gmra.mrb[64].mxu0 %vm1587_vm1, %v1175_v40 }
 0x112   :  { %v818_v49 = vadd.f32 %v782_v41, %v458_v47  ;;  %6615 = vmatpush3.bf16.msra.mxu0 %v6995_v39  ;;  %6611 = vmatmul.mubr.msk.bf16.vlgmr.msra.gmra.mrb[64].mxu1 %vm1587_vm1, %v1176_v45  ;;  %v1141_v51 = vmax.f32 %v1105_v46, 0.0 }
 0x113   :  { %6623 = vmatpush3.bf16.msra.mxu1 %v6996_v44  ;;  %6616 = vmatprep.subr.bf16.mxu0 %v7073_v5 }
 0x114   :  { %v1106_v53 = vadd.f32 %v5872_v48, %v818_v49  ;;  %6624 = vmatprep.subr.bf16.mxu1 %v7073_v5  ;;  %6618 = vmatprep.mubr.msk.bf16.mxu0 %vm7074_vm0, %v7073_v5  ;;  %v1177_v56 = vpack.c.bf16 %v1141_v51, %v1141_v51 }
 0x115   :  { %6626 = vmatprep.mubr.msk.bf16.mxu1 %vm7074_vm0, %v7073_v5 }
 0x116   :  { %v1142_v54 = vmax.f32 %v1106_v53, 0.0  ;;  %6617 = vmatpush3.bf16.msra.mxu0 %v6997_v50 }
 0x117   :  { %6625 = vmatpush3.bf16.msra.mxu1 %v6998_v52  ;;  %6630 = vmatprep.subr.bf16.mxu0 %v7073_v5  ;;  %v7011_v52 = vld [vmem:[%s8462_s5 + $0x60] sm:$0xff]  }
 0x118   :  { %v1178_v58 = vpack.c.bf16 %v1142_v54, %v1142_v54  ;;  %6638 = vmatprep.subr.bf16.mxu1 %v7073_v5  ;;  %v7012_v54 = vld [vmem:[%s8462_s5 + $0x70] sm:$0xff]  }
 0x119   :  { %6619 = vmatmul.mubr.msk.bf16.vlgmr.msra.gmra.mrb[68].mxu0 %vm1587_vm1, %v1177_v56  ;;  %v5879_v56 = vld [vmem:[%s8463_s4 + $0x6] ss:$0 sm:$0xff] }
 0x11a   :  { %6627 = vmatmul.mubr.msk.bf16.vlgmr.msra.gmra.mrb[68].mxu1 %vm1587_vm1, %v1178_v58  ;;  %6631 = vmatpush3.bf16.msra.mxu0 %v6999_v55 }
 0x11b   :  { %6639 = vmatpush3.bf16.msra.mxu1 %v7000_v57  ;;  %6632 = vmatprep.subr.bf16.mxu0 %v7073_v5  ;;  %v5880_v57 = vld [vmem:[%s8463_s4 + $0x7] ss:$0 sm:$0xff] }
 0x11c   :  { %6640 = vmatprep.subr.bf16.mxu1 %v7073_v5  ;;  %6634 = vmatprep.mubr.msk.bf16.mxu0 %vm7074_vm0, %v7073_v5 }
 0x11d   :  { %6642 = vmatprep.mubr.msk.bf16.mxu1 %vm7074_vm0, %v7073_v5 }
 0x11e   :  { %6633 = vmatpush3.bf16.msra.mxu0 %v7001_v59  ;;  %v7013_v59 = vld [vmem:[%s8462_s5 + $0x68] sm:$0xff]  }
 0x11f   :  { %6641 = vmatpush3.bf16.msra.mxu1 %v7002_v60  ;;  %6646 = vmatprep.subr.bf16.mxu0 %v7073_v5 }
 0x120   :  { %6654 = vmatprep.subr.bf16.mxu1 %v7073_v5 }
 0x164   :  { %v1625_v63 = vpop.f32.mrb[0].mxu0  ;;  %v1680_v0 = vpop.f32.mrb[0].mxu1 }
 0x165   :  { %v1626_v1 = vadd.f32 %v5873_v61, %v1625_v63  ;;  %v1681_v2 = vadd.f32 %v5874_v62, %v1680_v0  ;;  %v6348_v3 = vpop.f32.mrb[1].mxu0  ;;  %v6356_v4 = vpop.f32.mrb[1].mxu1  ;;  %v7014_v63 = vld [vmem:[%s8462_s5 + $0x78] sm:$0xff]  }
 0x166   :  { %v1628_v6 = vpop.f32.mrb[2].mxu0  ;;  %v1683_v7 = vpop.f32.mrb[2].mxu1 }
 0x167   :  { %v3556_v8 = vmax.f32 %v1626_v1, 0.0  ;;  %v3557_v9 = vmax.f32 %v1681_v2, 0.0  ;;  %v6349_v10 = vpop.f32.mrb[3].mxu0  ;;  %v6357_v11 = vpop.f32.mrb[3].mxu1 }
 0x168   :  { %v7016_v11 = vld [vmem:[%s8462_s5 + $0x90] sm:$0xff]  }
 0x169   :  { %v3592_v14 = vpack.c.bf16 %v3556_v8, %v3556_v8  ;;  %v3593_v15 = vpack.c.bf16 %v3557_v9, %v3557_v9  ;;  %v7015_v9 = vld [vmem:[%s8462_s5 + $0x80] sm:$0xff]  }
 0x16b   :  { %6635 = vmatmul.mubr.msk.bf16.vlgmr.msra.gmra.mrb[72].mxu0 %vm1587_vm1, %v3592_v14  ;;  %6643 = vmatmul.mubr.msk.bf16.vlgmr.msra.gmra.mrb[72].mxu1 %vm1587_vm1, %v3593_v15  ;;  %v5882_v14 = vld [vmem:[%s8463_s4 + $0x9] ss:$0 sm:$0xff] }
 0x16c   :  { %6647 = vmatpush3.bf16.msra.mxu0 %v7003_v12  ;;  %v1735_v18 = vpop.f32.mrb[4].mxu0  ;;  %6655 = vmatpush3.bf16.msra.mxu1 %v7004_v13  ;;  %v5881_v13 = vld [vmem:[%s8463_s4 + $0x8] ss:$0 sm:$0xff] }
 0x16d   :  { %v1736_v21 = vadd.f32 %v5875_v16, %v1735_v18  ;;  %v6364_v22 = vpop.f32.mrb[5].mxu0  ;;  %v1790_v23 = vpop.f32.mrb[4].mxu1  ;;  %6648 = vmatprep.subr.bf16.mxu0 %v7073_v5  ;;  %6656 = vmatprep.subr.bf16.mxu1 %v7073_v5  ;;  %v7017_v16 = vld [vmem:[%s8462_s5 + $0x88] sm:$0xff]  }
 0x16e   :  { %v1791_v24 = vadd.f32 %v5876_v17, %v1790_v23  ;;  %v1738_v25 = vpop.f32.mrb[6].mxu0  ;;  %v6372_v26 = vpop.f32.mrb[5].mxu1  ;;  %6650 = vmatprep.mubr.msk.bf16.mxu0 %vm7074_vm0, %v7073_v5  ;;  %6658 = vmatprep.mubr.msk.bf16.mxu1 %vm7074_vm0, %v7073_v5 }
 0x16f   :  { %v3558_v27 = vmax.f32 %v1736_v21, 0.0  ;;  %v6365_v28 = vpop.f32.mrb[7].mxu0  ;;  %v1793_v29 = vpop.f32.mrb[6].mxu1 }
 0x170   :  { %v3559_v30 = vmax.f32 %v1791_v24, 0.0  ;;  %6649 = vmatpush3.bf16.msra.mxu0 %v7005_v19  ;;  %v6373_v31 = vpop.f32.mrb[7].mxu1  ;;  %6657 = vmatpush3.bf16.msra.mxu1 %v7006_v20  ;;  %v7018_v20 = vld [vmem:[%s8462_s5 + $0x98] sm:$0xff]   ;;  %v7019_v29 = vld [vmem:[%s8462_s5 + $0xa0] sm:$0xff]  }
 0x171   :  { %v3594_v33 = vpack.c.bf16 %v3558_v27, %v3558_v27  ;;  %6662 = vmatprep.subr.bf16.mxu0 %v7073_v5  ;;  %6670 = vmatprep.subr.bf16.mxu1 %v7073_v5  ;;  %v7020_v31 = vld [vmem:[%s8462_s5 + $0xb0] sm:$0xff]  }
 0x172   :  { %v3595_v35 = vpack.c.bf16 %v3559_v30, %v3559_v30 }
 0x173   :  { %6651 = vmatmul.mubr.msk.bf16.vlgmr.msra.gmra.mrb[76].mxu0 %vm1587_vm1, %v3594_v33  ;;  %v5883_v33 = vld [vmem:[%s8463_s4 + $0xa] ss:$0 sm:$0xff] }
 0x174   :  { %6663 = vmatpush3.bf16.msra.mxu0 %v7007_v32  ;;  %v1845_v37 = vpop.f32.mrb[8].mxu0  ;;  %6659 = vmatmul.mubr.msk.bf16.vlgmr.msra.gmra.mrb[76].mxu1 %vm1587_vm1, %v3595_v35 }
 0x175   :  { %v1846_v39 = vadd.f32 %v5877_v36, %v1845_v37  ;;  %v6380_v40 = vpop.f32.mrb[9].mxu0  ;;  %v1900_v41 = vpop.f32.mrb[8].mxu1  ;;  %6671 = vmatpush3.bf16.msra.mxu1 %v7008_v34  ;;  %6664 = vmatprep.subr.bf16.mxu0 %v7073_v5  ;;  %v5884_v34 = vld [vmem:[%s8463_s4 + $0xb] ss:$0 sm:$0xff] }
 0x176   :  { %v1901_v44 = vadd.f32 %v5878_v42, %v1900_v41  ;;  %v1848_v45 = vpop.f32.mrb[10].mxu0  ;;  %v6388_v46 = vpop.f32.mrb[9].mxu1  ;;  %6672 = vmatprep.subr.bf16.mxu1 %v7073_v5  ;;  %6666 = vmatprep.mubr.msk.bf16.mxu0 %vm7074_vm0, %v7073_v5  ;;  %v7021_v36 = vld [vmem:[%s8462_s5 + $0xa8] sm:$0xff]  }
 0x177   :  { %v3560_v47 = vmax.f32 %v1846_v39, 0.0  ;;  %v6381_v48 = vpop.f32.mrb[11].mxu0  ;;  %v1903_v49 = vpop.f32.mrb[10].mxu1  ;;  %6674 = vmatprep.mubr.msk.bf16.mxu1 %vm7074_vm0, %v7073_v5  ;;  %v7022_v39 = vld [vmem:[%s8462_s5 + $0xb8] sm:$0xff]  }
 0x178   :  { %v3561_v50 = vmax.f32 %v1901_v44, 0.0  ;;  %6665 = vmatpush3.bf16.msra.mxu0 %v7009_v38  ;;  %v6389_v51 = vpop.f32.mrb[11].mxu1  ;;  %v7023_v49 = vld [vmem:[%s8462_s5 + $0xc0] sm:$0xff]  }
 0x179   :  { %v3596_v53 = vpack.c.bf16 %v3560_v47, %v3560_v47  ;;  %6673 = vmatpush3.bf16.msra.mxu1 %v7010_v43  ;;  %6678 = vmatprep.subr.bf16.mxu0 %v7073_v5  ;;  %v7024_v51 = vld [vmem:[%s8462_s5 + $0xd0] sm:$0xff]  }
 0x17a   :  { %v3597_v55 = vpack.c.bf16 %v3561_v50, %v3561_v50  ;;  %6686 = vmatprep.subr.bf16.mxu1 %v7073_v5 }
 0x17b   :  { %6667 = vmatmul.mubr.msk.bf16.vlgmr.msra.gmra.mrb[80].mxu0 %vm1587_vm1, %v3596_v53  ;;  %v5885_v53 = vld [vmem:[%s8463_s4 + $0xc] ss:$0 sm:$0xff] }
 0x17c   :  { %6679 = vmatpush3.bf16.msra.mxu0 %v7011_v52  ;;  %v1955_v58 = vpop.f32.mrb[12].mxu0  ;;  %6675 = vmatmul.mubr.msk.bf16.vlgmr.msra.gmra.mrb[80].mxu1 %vm1587_vm1, %v3597_v55 }
 0x17d   :  { %v1956_v60 = vadd.f32 %v5879_v56, %v1955_v58  ;;  %v6396_v61 = vpop.f32.mrb[13].mxu0  ;;  %v2010_v62 = vpop.f32.mrb[12].mxu1  ;;  %6687 = vmatpush3.bf16.msra.mxu1 %v7012_v54  ;;  %6680 = vmatprep.subr.bf16.mxu0 %v7073_v5  ;;  %v5886_v54 = vld [vmem:[%s8463_s4 + $0xd] ss:$0 sm:$0xff] }
 0x17e   :  { %v2011_v0 = vadd.f32 %v5880_v57, %v2010_v62  ;;  %v1958_v1 = vpop.f32.mrb[14].mxu0  ;;  %v6404_v2 = vpop.f32.mrb[13].mxu1  ;;  %6688 = vmatprep.subr.bf16.mxu1 %v7073_v5  ;;  %6682 = vmatprep.mubr.msk.bf16.mxu0 %vm7074_vm0, %v7073_v5  ;;  %v7025_v56 = vld [vmem:[%s8462_s5 + $0xc8] sm:$0xff]  }
 0x17f   :  { %v3562_v3 = vmax.f32 %v1956_v60, 0.0  ;;  %v6397_v4 = vpop.f32.mrb[15].mxu0  ;;  %v2013_v6 = vpop.f32.mrb[14].mxu1  ;;  %6690 = vmatprep.mubr.msk.bf16.mxu1 %vm7074_vm0, %v7073_v5  ;;  %v7026_v60 = vld [vmem:[%s8462_s5 + $0xd8] sm:$0xff]  }
 0x180   :  { %v3563_v7 = vmax.f32 %v2011_v0, 0.0  ;;  %6681 = vmatpush3.bf16.msra.mxu0 %v7013_v59  ;;  %v6405_v8 = vpop.f32.mrb[15].mxu1  ;;  %v7027_v6 = vld [vmem:[%s8462_s5 + $0xe0] sm:$0xff]  }
 0x181   :  { %v3598_v10 = vpack.c.bf16 %v3562_v3, %v3562_v3  ;;  %6689 = vmatpush3.bf16.msra.mxu1 %v7014_v63  ;;  %6694 = vmatprep.subr.bf16.mxu0 %v7073_v5  ;;  %v7028_v8 = vld [vmem:[%s8462_s5 + $0xf0] sm:$0xff]  }
 0x182   :  { %v3599_v12 = vpack.c.bf16 %v3563_v7, %v3563_v7  ;;  %6702 = vmatprep.subr.bf16.mxu1 %v7073_v5 }
 0x183   :  { %6683 = vmatmul.mubr.msk.bf16.vlgmr.msra.gmra.mrb[84].mxu0 %vm1587_vm1, %v3598_v10  ;;  %v5887_v10 = vld [vmem:[%s8463_s4 + $0xe] ss:$0 sm:$0xff] }
 0x184   :  { %6695 = vmatpush3.bf16.msra.mxu0 %v7015_v9  ;;  %v2065_v15 = vpop.f32.mrb[16].mxu0  ;;  %6691 = vmatmul.mubr.msk.bf16.vlgmr.msra.gmra.mrb[84].mxu1 %vm1587_vm1, %v3599_v12 }
 0x185   :  { %v2066_v17 = vadd.f32 %v5881_v13, %v2065_v15  ;;  %v6412_v18 = vpop.f32.mrb[17].mxu0  ;;  %v2120_v19 = vpop.f32.mrb[16].mxu1  ;;  %6703 = vmatpush3.bf16.msra.mxu1 %v7016_v11  ;;  %6696 = vmatprep.subr.bf16.mxu0 %v7073_v5  ;;  %v5888_v11 = vld [vmem:[%s8463_s4 + $0xf] ss:$0 sm:$0xff] }
 0x186   :  { %v2121_v21 = vadd.f32 %v5882_v14, %v2120_v19  ;;  %v2068_v22 = vpop.f32.mrb[18].mxu0  ;;  %v6420_v23 = vpop.f32.mrb[17].mxu1  ;;  %6704 = vmatprep.subr.bf16.mxu1 %v7073_v5  ;;  %6698 = vmatprep.mubr.msk.bf16.mxu0 %vm7074_vm0, %v7073_v5  ;;  %v7029_v13 = vld [vmem:[%s8462_s5 + $0xe8] sm:$0xff]  }
 0x187   :  { %v3564_v24 = vmax.f32 %v2066_v17, 0.0  ;;  %v6413_v25 = vpop.f32.mrb[19].mxu0  ;;  %v2123_v26 = vpop.f32.mrb[18].mxu1  ;;  %6706 = vmatprep.mubr.msk.bf16.mxu1 %vm7074_vm0, %v7073_v5  ;;  %v7030_v17 = vld [vmem:[%s8462_s5 + $0xf8] sm:$0xff]  }
 0x188   :  { %v3565_v27 = vmax.f32 %v2121_v21, 0.0  ;;  %6697 = vmatpush3.bf16.msra.mxu0 %v7017_v16  ;;  %v6421_v28 = vpop.f32.mrb[19].mxu1  ;;  %v7031_v26 = vld [vmem:[%s8462_s5 + $0x100] sm:$0xff]  }
 0x189   :  { %v3600_v30 = vpack.c.bf16 %v3564_v24, %v3564_v24  ;;  %6705 = vmatpush3.bf16.msra.mxu1 %v7018_v20  ;;  %6710 = vmatprep.subr.bf16.mxu0 %v7073_v5  ;;  %v7032_v28 = vld [vmem:[%s8462_s5 + $0x110] sm:$0xff]  }
 0x18a   :  { %v3601_v32 = vpack.c.bf16 %v3565_v27, %v3565_v27  ;;  %6718 = vmatprep.subr.bf16.mxu1 %v7073_v5 }
 0x18b   :  { %6699 = vmatmul.mubr.msk.bf16.vlgmr.msra.gmra.mrb[88].mxu0 %vm1587_vm1, %v3600_v30  ;;  %v5889_v30 = vld [vmem:[%s8463_s4 + $0x10] ss:$0 sm:$0xff] }
 0x18c   :  { %6711 = vmatpush3.bf16.msra.mxu0 %v7019_v29  ;;  %v2175_v35 = vpop.f32.mrb[20].mxu0  ;;  %6707 = vmatmul.mubr.msk.bf16.vlgmr.msra.gmra.mrb[88].mxu1 %vm1587_vm1, %v3601_v32 }
 0x18d   :  { %v2176_v42 = vadd.f32 %v5883_v33, %v2175_v35  ;;  %v6428_v37 = vpop.f32.mrb[21].mxu0  ;;  %v2230_v38 = vpop.f32.mrb[20].mxu1  ;;  %6719 = vmatpush3.bf16.msra.mxu1 %v7020_v31  ;;  %6712 = vmatprep.subr.bf16.mxu0 %v7073_v5  ;;  %v5890_v31 = vld [vmem:[%s8463_s4 + $0x11] ss:$0 sm:$0xff]  ;;  %v7033_v33 = vld [vmem:[%s8462_s5 + $0x108] sm:$0xff]  }
 0x18e   :  { %v2231_v40 = vadd.f32 %v5884_v34, %v2230_v38  ;;  %v2178_v41 = vpop.f32.mrb[22].mxu0  ;;  %v6436_v43 = vpop.f32.mrb[21].mxu1  ;;  %6720 = vmatprep.subr.bf16.mxu1 %v7073_v5  ;;  %6714 = vmatprep.mubr.msk.bf16.mxu0 %vm7074_vm0, %v7073_v5 }
 0x18f   :  { %v3566_v44 = vmax.f32 %v2176_v42, 0.0  ;;  %v6429_v45 = vpop.f32.mrb[23].mxu0  ;;  %v2233_v46 = vpop.f32.mrb[22].mxu1  ;;  %6722 = vmatprep.mubr.msk.bf16.mxu1 %vm7074_vm0, %v7073_v5  ;;  %v7034_v42 = vld [vmem:[%s8462_s5 + $0x118] sm:$0xff]  }
 0x190   :  { %v3567_v47 = vmax.f32 %v2231_v40, 0.0  ;;  %6713 = vmatpush3.bf16.msra.mxu0 %v7021_v36  ;;  %v6437_v48 = vpop.f32.mrb[23].mxu1  ;;  %v7035_v46 = vld [vmem:[%s8462_s5 + $0x120] sm:$0xff]  }
 0x191   :  { %v3602_v50 = vpack.c.bf16 %v3566_v44, %v3566_v44  ;;  %6721 = vmatpush3.bf16.msra.mxu1 %v7022_v39  ;;  %6726 = vmatprep.subr.bf16.mxu0 %v7073_v5  ;;  %v7036_v48 = vld [vmem:[%s8462_s5 + $0x130] sm:$0xff]  }
 0x192   :  { %v3603_v52 = vpack.c.bf16 %v3567_v47, %v3567_v47  ;;  %6734 = vmatprep.subr.bf16.mxu1 %v7073_v5 }
 0x193   :  { %6715 = vmatmul.mubr.msk.bf16.vlgmr.msra.gmra.mrb[92].mxu0 %vm1587_vm1, %v3602_v50  ;;  %v5891_v50 = vld [vmem:[%s8463_s4 + $0x12] ss:$0 sm:$0xff] }
 0x194   :  { %6727 = vmatpush3.bf16.msra.mxu0 %v7023_v49  ;;  %v2285_v55 = vpop.f32.mrb[24].mxu0  ;;  %6723 = vmatmul.mubr.msk.bf16.vlgmr.msra.gmra.mrb[92].mxu1 %vm1587_vm1, %v3603_v52 }
 0x195   :  { %v2286_v57 = vadd.f32 %v5885_v53, %v2285_v55  ;;  %v6444_v58 = vpop.f32.mrb[25].mxu0  ;;  %v2340_v59 = vpop.f32.mrb[24].mxu1  ;;  %6735 = vmatpush3.bf16.msra.mxu1 %v7024_v51  ;;  %6728 = vmatprep.subr.bf16.mxu0 %v7073_v5  ;;  %v5892_v51 = vld [vmem:[%s8463_s4 + $0x13] ss:$0 sm:$0xff]  ;;  %v7037_v53 = vld [vmem:[%s8462_s5 + $0x128] sm:$0xff]  }
 0x196   :  { %v2341_v61 = vadd.f32 %v5886_v54, %v2340_v59  ;;  %v2288_v62 = vpop.f32.mrb[26].mxu0  ;;  %v6452_v63 = vpop.f32.mrb[25].mxu1  ;;  %6736 = vmatprep.subr.bf16.mxu1 %v7073_v5  ;;  %6730 = vmatprep.mubr.msk.bf16.mxu0 %vm7074_vm0, %v7073_v5 }
 0x197   :  { %v3568_v0 = vmax.f32 %v2286_v57, 0.0  ;;  %v6445_v1 = vpop.f32.mrb[27].mxu0  ;;  %v2343_v2 = vpop.f32.mrb[26].mxu1  ;;  %6738 = vmatprep.mubr.msk.bf16.mxu1 %vm7074_vm0, %v7073_v5  ;;  %v7038_v57 = vld [vmem:[%s8462_s5 + $0x138] sm:$0xff]  }
 0x198   :  { %v3569_v3 = vmax.f32 %v2341_v61, 0.0  ;;  %6729 = vmatpush3.bf16.msra.mxu0 %v7025_v56  ;;  %v6453_v4 = vpop.f32.mrb[27].mxu1  ;;  %v7039_v2 = vld [vmem:[%s8462_s5 + $0x140] sm:$0xff]  }
 0x199   :  { %v3604_v7 = vpack.c.bf16 %v3568_v0, %v3568_v0  ;;  %6737 = vmatpush3.bf16.msra.mxu1 %v7026_v60  ;;  %6742 = vmatprep.subr.bf16.mxu0 %v7073_v5  ;;  %v7040_v4 = vld [vmem:[%s8462_s5 + $0x150] sm:$0xff]  }
 0x19a   :  { %v3605_v9 = vpack.c.bf16 %v3569_v3, %v3569_v3  ;;  %6750 = vmatprep.subr.bf16.mxu1 %v7073_v5 }
 0x19b   :  { %6731 = vmatmul.mubr.msk.bf16.vlgmr.msra.gmra.mrb[96].mxu0 %vm1587_vm1, %v3604_v7  ;;  %v5893_v7 = vld [vmem:[%s8463_s4 + $0x14] ss:$0 sm:$0xff] }
 0x19c   :  { %6743 = vmatpush3.bf16.msra.mxu0 %v7027_v6  ;;  %v2395_v12 = vpop.f32.mrb[28].mxu0  ;;  %6739 = vmatmul.mubr.msk.bf16.vlgmr.msra.gmra.mrb[96].mxu1 %vm1587_vm1, %v3605_v9 }
 0x19d   :  { %v2396_v14 = vadd.f32 %v5887_v10, %v2395_v12  ;;  %v6460_v15 = vpop.f32.mrb[29].mxu0  ;;  %v2450_v16 = vpop.f32.mrb[28].mxu1  ;;  %6751 = vmatpush3.bf16.msra.mxu1 %v7028_v8  ;;  %6744 = vmatprep.subr.bf16.mxu0 %v7073_v5  ;;  %v5894_v8 = vld [vmem:[%s8463_s4 + $0x15] ss:$0 sm:$0xff]  ;;  %v7041_v10 = vld [vmem:[%s8462_s5 + $0x148] sm:$0xff]  }
 0x19e   :  { %v2451_v18 = vadd.f32 %v5888_v11, %v2450_v16  ;;  %v2398_v19 = vpop.f32.mrb[30].mxu0  ;;  %v6468_v20 = vpop.f32.mrb[29].mxu1  ;;  %6752 = vmatprep.subr.bf16.mxu1 %v7073_v5  ;;  %6746 = vmatprep.mubr.msk.bf16.mxu0 %vm7074_vm0, %v7073_v5 }
 0x19f   :  { %v3570_v21 = vmax.f32 %v2396_v14, 0.0  ;;  %v6461_v22 = vpop.f32.mrb[31].mxu0  ;;  %v2453_v23 = vpop.f32.mrb[30].mxu1  ;;  %6754 = vmatprep.mubr.msk.bf16.mxu1 %vm7074_vm0, %v7073_v5  ;;  %v7042_v14 = vld [vmem:[%s8462_s5 + $0x158] sm:$0xff]  }
 0x1a0   :  { %v3571_v24 = vmax.f32 %v2451_v18, 0.0  ;;  %6745 = vmatpush3.bf16.msra.mxu0 %v7029_v13  ;;  %v6469_v25 = vpop.f32.mrb[31].mxu1  ;;  %v7043_v23 = vld [vmem:[%s8462_s5 + $0x160] sm:$0xff]  }
 0x1a1   :  { %v3606_v27 = vpack.c.bf16 %v3570_v21, %v3570_v21  ;;  %6753 = vmatpush3.bf16.msra.mxu1 %v7030_v17  ;;  %6758 = vmatprep.subr.bf16.mxu0 %v7073_v5  ;;  %v7044_v25 = vld [vmem:[%s8462_s5 + $0x170] sm:$0xff]  }
 0x1a2   :  { %v3607_v29 = vpack.c.bf16 %v3571_v24, %v3571_v24  ;;  %6766 = vmatprep.subr.bf16.mxu1 %v7073_v5 }
 0x1a3   :  { %6747 = vmatmul.mubr.msk.bf16.vlgmr.msra.gmra.mrb[100].mxu0 %vm1587_vm1, %v3606_v27  ;;  %v5895_v27 = vld [vmem:[%s8463_s4 + $0x16] ss:$0 sm:$0xff] }
 0x1a4   :  { %6759 = vmatpush3.bf16.msra.mxu0 %v7031_v26  ;;  %v2505_v32 = vpop.f32.mrb[32].mxu0  ;;  %6755 = vmatmul.mubr.msk.bf16.vlgmr.msra.gmra.mrb[100].mxu1 %vm1587_vm1, %v3607_v29 }
 0x1a5   :  { %v2506_v34 = vadd.f32 %v5889_v30, %v2505_v32  ;;  %v6476_v35 = vpop.f32.mrb[33].mxu0  ;;  %v2560_v36 = vpop.f32.mrb[32].mxu1  ;;  %6767 = vmatpush3.bf16.msra.mxu1 %v7032_v28  ;;  %6760 = vmatprep.subr.bf16.mxu0 %v7073_v5  ;;  %v5896_v28 = vld [vmem:[%s8463_s4 + $0x17] ss:$0 sm:$0xff]  ;;  %v7045_v30 = vld [vmem:[%s8462_s5 + $0x168] sm:$0xff]  }
 0x1a6   :  { %v2561_v37 = vadd.f32 %v5890_v31, %v2560_v36  ;;  %v2508_v38 = vpop.f32.mrb[34].mxu0  ;;  %v6484_v39 = vpop.f32.mrb[33].mxu1  ;;  %6768 = vmatprep.subr.bf16.mxu1 %v7073_v5  ;;  %6762 = vmatprep.mubr.msk.bf16.mxu0 %vm7074_vm0, %v7073_v5 }
 0x1a7   :  { %v3572_v40 = vmax.f32 %v2506_v34, 0.0  ;;  %v6477_v41 = vpop.f32.mrb[35].mxu0  ;;  %v2563_v43 = vpop.f32.mrb[34].mxu1  ;;  %6770 = vmatprep.mubr.msk.bf16.mxu1 %vm7074_vm0, %v7073_v5  ;;  %v7046_v34 = vld [vmem:[%s8462_s5 + $0x178] sm:$0xff]  }
 0x1a8   :  { %v3573_v44 = vmax.f32 %v2561_v37, 0.0  ;;  %6761 = vmatpush3.bf16.msra.mxu0 %v7033_v33  ;;  %v6485_v45 = vpop.f32.mrb[35].mxu1  ;;  %v7047_v43 = vld [vmem:[%s8462_s5 + $0x180] sm:$0xff]  }
 0x1a9   :  { %v3608_v47 = vpack.c.bf16 %v3572_v40, %v3572_v40  ;;  %6769 = vmatpush3.bf16.msra.mxu1 %v7034_v42  ;;  %6774 = vmatprep.subr.bf16.mxu0 %v7073_v5  ;;  %v7048_v45 = vld [vmem:[%s8462_s5 + $0x190] sm:$0xff]  }
 0x1aa   :  { %v3609_v49 = vpack.c.bf16 %v3573_v44, %v3573_v44  ;;  %6782 = vmatprep.subr.bf16.mxu1 %v7073_v5 }
 0x1ab   :  { %6763 = vmatmul.mubr.msk.bf16.vlgmr.msra.gmra.mrb[104].mxu0 %vm1587_vm1, %v3608_v47  ;;  %v5897_v47 = vld [vmem:[%s8463_s4 + $0x18] ss:$0 sm:$0xff] }
 0x1ac   :  { %6775 = vmatpush3.bf16.msra.mxu0 %v7035_v46  ;;  %v2615_v52 = vpop.f32.mrb[36].mxu0  ;;  %6771 = vmatmul.mubr.msk.bf16.vlgmr.msra.gmra.mrb[104].mxu1 %vm1587_vm1, %v3609_v49 }
 0x1ad   :  { %v2616_v54 = vadd.f32 %v5891_v50, %v2615_v52  ;;  %v6492_v55 = vpop.f32.mrb[37].mxu0  ;;  %v2670_v56 = vpop.f32.mrb[36].mxu1  ;;  %6783 = vmatpush3.bf16.msra.mxu1 %v7036_v48  ;;  %6776 = vmatprep.subr.bf16.mxu0 %v7073_v5  ;;  %v5898_v48 = vld [vmem:[%s8463_s4 + $0x19] ss:$0 sm:$0xff]  ;;  %v7049_v50 = vld [vmem:[%s8462_s5 + $0x188] sm:$0xff]  }
 0x1ae   :  { %v2671_v58 = vadd.f32 %v5892_v51, %v2670_v56  ;;  %v2618_v59 = vpop.f32.mrb[38].mxu0  ;;  %v6500_v60 = vpop.f32.mrb[37].mxu1  ;;  %6784 = vmatprep.subr.bf16.mxu1 %v7073_v5  ;;  %6778 = vmatprep.mubr.msk.bf16.mxu0 %vm7074_vm0, %v7073_v5 }
 0x1af   :  { %v3574_v61 = vmax.f32 %v2616_v54, 0.0  ;;  %v6493_v62 = vpop.f32.mrb[39].mxu0  ;;  %v2673_v63 = vpop.f32.mrb[38].mxu1  ;;  %6786 = vmatprep.mubr.msk.bf16.mxu1 %vm7074_vm0, %v7073_v5  ;;  %v7050_v54 = vld [vmem:[%s8462_s5 + $0x198] sm:$0xff]  }
 0x1b0   :  { %v3575_v0 = vmax.f32 %v2671_v58, 0.0  ;;  %6777 = vmatpush3.bf16.msra.mxu0 %v7037_v53  ;;  %v6501_v1 = vpop.f32.mrb[39].mxu1  ;;  %v7051_v63 = vld [vmem:[%s8462_s5 + $0x1a0] sm:$0xff]  }
 0x1b1   :  { %v3610_v3 = vpack.c.bf16 %v3574_v61, %v3574_v61  ;;  %6785 = vmatpush3.bf16.msra.mxu1 %v7038_v57  ;;  %6790 = vmatprep.subr.bf16.mxu0 %v7073_v5  ;;  %v7052_v1 = vld [vmem:[%s8462_s5 + $0x1b0] sm:$0xff]  }
 0x1b2   :  { %v3611_v6 = vpack.c.bf16 %v3575_v0, %v3575_v0  ;;  %6798 = vmatprep.subr.bf16.mxu1 %v7073_v5 }
 0x1b3   :  { %6779 = vmatmul.mubr.msk.bf16.vlgmr.msra.gmra.mrb[108].mxu0 %vm1587_vm1, %v3610_v3  ;;  %v5899_v3 = vld [vmem:[%s8463_s4 + $0x1a] ss:$0 sm:$0xff] }
 0x1b4   :  { %6791 = vmatpush3.bf16.msra.mxu0 %v7039_v2  ;;  %v2725_v9 = vpop.f32.mrb[40].mxu0  ;;  %6787 = vmatmul.mubr.msk.bf16.vlgmr.msra.gmra.mrb[108].mxu1 %vm1587_vm1, %v3611_v6 }
 0x1b5   :  { %v2726_v11 = vadd.f32 %v5893_v7, %v2725_v9  ;;  %v6508_v12 = vpop.f32.mrb[41].mxu0  ;;  %v2780_v13 = vpop.f32.mrb[40].mxu1  ;;  %6799 = vmatpush3.bf16.msra.mxu1 %v7040_v4  ;;  %6792 = vmatprep.subr.bf16.mxu0 %v7073_v5  ;;  %v5900_v4 = vld [vmem:[%s8463_s4 + $0x1b] ss:$0 sm:$0xff]  ;;  %v7053_v7 = vld [vmem:[%s8462_s5 + $0x1a8] sm:$0xff]  }
 0x1b6   :  { %v2781_v15 = vadd.f32 %v5894_v8, %v2780_v13  ;;  %v2728_v16 = vpop.f32.mrb[42].mxu0  ;;  %v6516_v17 = vpop.f32.mrb[41].mxu1  ;;  %6800 = vmatprep.subr.bf16.mxu1 %v7073_v5  ;;  %6794 = vmatprep.mubr.msk.bf16.mxu0 %vm7074_vm0, %v7073_v5 }
 0x1b7   :  { %v3576_v18 = vmax.f32 %v2726_v11, 0.0  ;;  %v6509_v19 = vpop.f32.mrb[43].mxu0  ;;  %v2783_v20 = vpop.f32.mrb[42].mxu1  ;;  %6802 = vmatprep.mubr.msk.bf16.mxu1 %vm7074_vm0, %v7073_v5  ;;  %v7054_v11 = vld [vmem:[%s8462_s5 + $0x1b8] sm:$0xff]  }
 0x1b8   :  { %v3577_v21 = vmax.f32 %v2781_v15, 0.0  ;;  %6793 = vmatpush3.bf16.msra.mxu0 %v7041_v10  ;;  %v6517_v22 = vpop.f32.mrb[43].mxu1  ;;  %v7055_v20 = vld [vmem:[%s8462_s5 + $0x1c0] sm:$0xff]  }
 0x1b9   :  { %v3612_v24 = vpack.c.bf16 %v3576_v18, %v3576_v18  ;;  %6801 = vmatpush3.bf16.msra.mxu1 %v7042_v14  ;;  %6806 = vmatprep.subr.bf16.mxu0 %v7073_v5  ;;  %v7056_v22 = vld [vmem:[%s8462_s5 + $0x1d0] sm:$0xff]  }
 0x1ba   :  { %v3613_v26 = vpack.c.bf16 %v3577_v21, %v3577_v21  ;;  %6814 = vmatprep.subr.bf16.mxu1 %v7073_v5 }
 0x1bb   :  { %6795 = vmatmul.mubr.msk.bf16.vlgmr.msra.gmra.mrb[112].mxu0 %vm1587_vm1, %v3612_v24  ;;  %v5901_v24 = vld [vmem:[%s8463_s4 + $0x1c] ss:$0 sm:$0xff] }
 0x1bc   :  { %6807 = vmatpush3.bf16.msra.mxu0 %v7043_v23  ;;  %v2835_v29 = vpop.f32.mrb[44].mxu0  ;;  %6803 = vmatmul.mubr.msk.bf16.vlgmr.msra.gmra.mrb[112].mxu1 %vm1587_vm1, %v3613_v26 }
 0x1bd   :  { %v2836_v31 = vadd.f32 %v5895_v27, %v2835_v29  ;;  %v6524_v32 = vpop.f32.mrb[45].mxu0  ;;  %v2890_v33 = vpop.f32.mrb[44].mxu1  ;;  %6815 = vmatpush3.bf16.msra.mxu1 %v7044_v25  ;;  %6808 = vmatprep.subr.bf16.mxu0 %v7073_v5  ;;  %v5902_v25 = vld [vmem:[%s8463_s4 + $0x1d] ss:$0 sm:$0xff]  ;;  %v7057_v27 = vld [vmem:[%s8462_s5 + $0x1c8] sm:$0xff]  }
 0x1be   :  { %v2891_v35 = vadd.f32 %v5896_v28, %v2890_v33  ;;  %v2838_v36 = vpop.f32.mrb[46].mxu0  ;;  %v6532_v42 = vpop.f32.mrb[45].mxu1  ;;  %6816 = vmatprep.subr.bf16.mxu1 %v7073_v5  ;;  %6810 = vmatprep.mubr.msk.bf16.mxu0 %vm7074_vm0, %v7073_v5 }
 0x1bf   :  { %v3578_v37 = vmax.f32 %v2836_v31, 0.0  ;;  %v6525_v38 = vpop.f32.mrb[47].mxu0  ;;  %v2893_v39 = vpop.f32.mrb[46].mxu1  ;;  %6818 = vmatprep.mubr.msk.bf16.mxu1 %vm7074_vm0, %v7073_v5  ;;  %v7058_v31 = vld [vmem:[%s8462_s5 + $0x1d8] sm:$0xff]  }
 0x1c0   :  { %v3579_v40 = vmax.f32 %v2891_v35, 0.0  ;;  %6809 = vmatpush3.bf16.msra.mxu0 %v7045_v30  ;;  %v6533_v41 = vpop.f32.mrb[47].mxu1  ;;  %v7059_v39 = vld [vmem:[%s8462_s5 + $0x1e0] sm:$0xff]  }
 0x1c1   :  { %v3614_v44 = vpack.c.bf16 %v3578_v37, %v3578_v37  ;;  %6817 = vmatpush3.bf16.msra.mxu1 %v7046_v34  ;;  %6822 = vmatprep.subr.bf16.mxu0 %v7073_v5  ;;  %v7060_v41 = vld [vmem:[%s8462_s5 + $0x1f0] sm:$0xff]  }
 0x1c2   :  { %v3615_v46 = vpack.c.bf16 %v3579_v40, %v3579_v40  ;;  %6830 = vmatprep.subr.bf16.mxu1 %v7073_v5 }
 0x1c3   :  { %6811 = vmatmul.mubr.msk.bf16.vlgmr.msra.gmra.mrb[116].mxu0 %vm1587_vm1, %v3614_v44  ;;  %v5903_v44 = vld [vmem:[%s8463_s4 + $0x1e] ss:$0 sm:$0xff] }
 0x1c4   :  { %6823 = vmatpush3.bf16.msra.mxu0 %v7047_v43  ;;  %v2945_v49 = vpop.f32.mrb[48].mxu0  ;;  %6819 = vmatmul.mubr.msk.bf16.vlgmr.msra.gmra.mrb[116].mxu1 %vm1587_vm1, %v3615_v46 }
 0x1c5   :  { %v2946_v51 = vadd.f32 %v5897_v47, %v2945_v49  ;;  %v6540_v52 = vpop.f32.mrb[49].mxu0  ;;  %v3000_v53 = vpop.f32.mrb[48].mxu1  ;;  %6831 = vmatpush3.bf16.msra.mxu1 %v7048_v45  ;;  %6824 = vmatprep.subr.bf16.mxu0 %v7073_v5  ;;  %v5904_v45 = vld [vmem:[%s8463_s4 + $0x1f] ss:$0 sm:$0xff]  ;;  %v7061_v47 = vld [vmem:[%s8462_s5 + $0x1e8] sm:$0xff]  }
 0x1c6   :  { %v3001_v55 = vadd.f32 %v5898_v48, %v3000_v53  ;;  %v2948_v56 = vpop.f32.mrb[50].mxu0  ;;  %v6548_v57 = vpop.f32.mrb[49].mxu1  ;;  %6832 = vmatprep.subr.bf16.mxu1 %v7073_v5  ;;  %6826 = vmatprep.mubr.msk.bf16.mxu0 %vm7074_vm0, %v7073_v5 }
 0x1c7   :  { %v3580_v58 = vmax.f32 %v2946_v51, 0.0  ;;  %v6541_v59 = vpop.f32.mrb[51].mxu0  ;;  %v3003_v60 = vpop.f32.mrb[50].mxu1  ;;  %6834 = vmatprep.mubr.msk.bf16.mxu1 %vm7074_vm0, %v7073_v5  ;;  %v7062_v51 = vld [vmem:[%s8462_s5 + $0x1f8] sm:$0xff]  }
 0x1c8   :  { %v3581_v61 = vmax.f32 %v3001_v55, 0.0  ;;  %6825 = vmatpush3.bf16.msra.mxu0 %v7049_v50  ;;  %v6549_v62 = vpop.f32.mrb[51].mxu1  ;;  %v7063_v60 = vld [vmem:[%s8462_s5 + $0x200] sm:$0xff]  }
 0x1c9   :  { %v3616_v0 = vpack.c.bf16 %v3580_v58, %v3580_v58  ;;  %6833 = vmatpush3.bf16.msra.mxu1 %v7050_v54  ;;  %6838 = vmatprep.subr.bf16.mxu0 %v7073_v5  ;;  %v7064_v62 = vld [vmem:[%s8462_s5 + $0x210] sm:$0xff]  }
 0x1ca   :  { %v3617_v2 = vpack.c.bf16 %v3581_v61, %v3581_v61  ;;  %6846 = vmatprep.subr.bf16.mxu1 %v7073_v5 }
 0x1cb   :  { %6827 = vmatmul.mubr.msk.bf16.vlgmr.msra.gmra.mrb[120].mxu0 %vm1587_vm1, %v3616_v0  ;;  %v5905_v0 = vld [vmem:[%s8463_s4 + $0x20] ss:$0 sm:$0xff] }
 0x1cc   :  { %6839 = vmatpush3.bf16.msra.mxu0 %v7051_v63  ;;  %v3055_v6 = vpop.f32.mrb[52].mxu0  ;;  %6835 = vmatmul.mubr.msk.bf16.vlgmr.msra.gmra.mrb[120].mxu1 %vm1587_vm1, %v3617_v2 }
 0x1cd   :  { %v3056_v8 = vadd.f32 %v5899_v3, %v3055_v6  ;;  %v6556_v9 = vpop.f32.mrb[53].mxu0  ;;  %v3110_v10 = vpop.f32.mrb[52].mxu1  ;;  %6847 = vmatpush3.bf16.msra.mxu1 %v7052_v1  ;;  %6840 = vmatprep.subr.bf16.mxu0 %v7073_v5  ;;  %v5906_v1 = vld [vmem:[%s8463_s4 + $0x21] ss:$0 sm:$0xff]  ;;  %v7065_v3 = vld [vmem:[%s8462_s5 + $0x208] sm:$0xff]  }
 0x1ce   :  { %v3111_v12 = vadd.f32 %v5900_v4, %v3110_v10  ;;  %v3058_v13 = vpop.f32.mrb[54].mxu0  ;;  %v6564_v14 = vpop.f32.mrb[53].mxu1  ;;  %6848 = vmatprep.subr.bf16.mxu1 %v7073_v5  ;;  %6842 = vmatprep.mubr.msk.bf16.mxu0 %vm7074_vm0, %v7073_v5 }
 0x1cf   :  { %v3582_v15 = vmax.f32 %v3056_v8, 0.0  ;;  %v6557_v16 = vpop.f32.mrb[55].mxu0  ;;  %v3113_v17 = vpop.f32.mrb[54].mxu1  ;;  %6850 = vmatprep.mubr.msk.bf16.mxu1 %vm7074_vm0, %v7073_v5  ;;  %v7066_v8 = vld [vmem:[%s8462_s5 + $0x218] sm:$0xff]  }
 0x1d0   :  { %v3583_v18 = vmax.f32 %v3111_v12, 0.0  ;;  %6841 = vmatpush3.bf16.msra.mxu0 %v7053_v7  ;;  %v6565_v19 = vpop.f32.mrb[55].mxu1  ;;  %v7067_v17 = vld [vmem:[%s8462_s5 + $0x220] sm:$0xff]  }
 0x1d1   :  { %v3618_v21 = vpack.c.bf16 %v3582_v15, %v3582_v15  ;;  %6849 = vmatpush3.bf16.msra.mxu1 %v7054_v11  ;;  %6854 = vmatprep.subr.bf16.mxu0 %v7073_v5  ;;  %v7068_v19 = vld [vmem:[%s8462_s5 + $0x230] sm:$0xff]  }
 0x1d2   :  { %v3619_v23 = vpack.c.bf16 %v3583_v18, %v3583_v18  ;;  %6862 = vmatprep.subr.bf16.mxu1 %v7073_v5 }
 0x1d3   :  { %6843 = vmatmul.mubr.msk.bf16.vlgmr.msra.gmra.mrb[124].mxu0 %vm1587_vm1, %v3618_v21  ;;  %v5907_v21 = vld [vmem:[%s8463_s4 + $0x22] ss:$0 sm:$0xff] }
 0x1d4   :  { %6855 = vmatpush3.bf16.msra.mxu0 %v7055_v20  ;;  %v3165_v26 = vpop.f32.mrb[56].mxu0  ;;  %6851 = vmatmul.mubr.msk.bf16.vlgmr.msra.gmra.mrb[124].mxu1 %vm1587_vm1, %v3619_v23 }
 0x1d5   :  { %v3166_v28 = vadd.f32 %v5901_v24, %v3165_v26  ;;  %v6572_v29 = vpop.f32.mrb[57].mxu0  ;;  %v3220_v30 = vpop.f32.mrb[56].mxu1  ;;  %6863 = vmatpush3.bf16.msra.mxu1 %v7056_v22  ;;  %6856 = vmatprep.subr.bf16.mxu0 %v7073_v5  ;;  %v5908_v22 = vld [vmem:[%s8463_s4 + $0x23] ss:$0 sm:$0xff]  ;;  %v7069_v24 = vld [vmem:[%s8462_s5 + $0x228] sm:$0xff]  }
 0x1d6   :  { %v3221_v32 = vadd.f32 %v5902_v25, %v3220_v30  ;;  %v3168_v33 = vpop.f32.mrb[58].mxu0  ;;  %v6580_v34 = vpop.f32.mrb[57].mxu1  ;;  %6864 = vmatprep.subr.bf16.mxu1 %v7073_v5  ;;  %6858 = vmatprep.mubr.msk.bf16.mxu0 %vm7074_vm0, %v7073_v5 }
 0x1d7   :  { %v3584_v35 = vmax.f32 %v3166_v28, 0.0  ;;  %v6573_v36 = vpop.f32.mrb[59].mxu0  ;;  %v3223_v42 = vpop.f32.mrb[58].mxu1  ;;  %6866 = vmatprep.mubr.msk.bf16.mxu1 %vm7074_vm0, %v7073_v5  ;;  %v7070_v28 = vld [vmem:[%s8462_s5 + $0x238] sm:$0xff]  }
 0x1d8   :  { %v3585_v37 = vmax.f32 %v3221_v32, 0.0  ;;  %6857 = vmatpush3.bf16.msra.mxu0 %v7057_v27  ;;  %v6581_v38 = vpop.f32.mrb[59].mxu1 }
 0x1d9   :  { %v3620_v40 = vpack.c.bf16 %v3584_v35, %v3584_v35  ;;  %6865 = vmatpush3.bf16.msra.mxu1 %v7058_v31  ;;  %6870 = vmatprep.subr.bf16.mxu0 %v7073_v5 }
 0x1da   :  { %v3621_v43 = vpack.c.bf16 %v3585_v37, %v3585_v37  ;;  %6878 = vmatprep.subr.bf16.mxu1 %v7073_v5 }
 0x1db   :  { %6859 = vmatmul.mubr.msk.bf16.vlgmr.msra.gmra.mrb[128].mxu0 %vm1587_vm1, %v3620_v40 }
 0x1dc   :  { %6871 = vmatpush3.bf16.msra.mxu0 %v7059_v39  ;;  %v3275_v46 = vpop.f32.mrb[60].mxu0  ;;  %6867 = vmatmul.mubr.msk.bf16.vlgmr.msra.gmra.mrb[128].mxu1 %vm1587_vm1, %v3621_v43 }
 0x1dd   :  { %v3276_v48 = vadd.f32 %v5903_v44, %v3275_v46  ;;  %v6588_v49 = vpop.f32.mrb[61].mxu0  ;;  %v3330_v50 = vpop.f32.mrb[60].mxu1  ;;  %6879 = vmatpush3.bf16.msra.mxu1 %v7060_v41  ;;  %6872 = vmatprep.subr.bf16.mxu0 %v7073_v5 }
 0x1de   :  { %v3331_v52 = vadd.f32 %v5904_v45, %v3330_v50  ;;  %v3278_v53 = vpop.f32.mrb[62].mxu0  ;;  %v6596_v54 = vpop.f32.mrb[61].mxu1  ;;  %6880 = vmatprep.subr.bf16.mxu1 %v7073_v5  ;;  %6874 = vmatprep.mubr.msk.bf16.mxu0 %vm7074_vm0, %v7073_v5 }
 0x1df   :  { %v3586_v55 = vmax.f32 %v3276_v48, 0.0  ;;  %v6589_v56 = vpop.f32.mrb[63].mxu0  ;;  %v3333_v57 = vpop.f32.mrb[62].mxu1  ;;  %6882 = vmatprep.mubr.msk.bf16.mxu1 %vm7074_vm0, %v7073_v5 }
 0x1e0   :  { %v3587_v58 = vmax.f32 %v3331_v52, 0.0  ;;  %6873 = vmatpush3.bf16.msra.mxu0 %v7061_v47  ;;  %v6597_v59 = vpop.f32.mrb[63].mxu1 }
 0x1e1   :  { %v3622_v61 = vpack.c.bf16 %v3586_v55, %v3586_v55  ;;  %6881 = vmatpush3.bf16.msra.mxu1 %v7062_v51  ;;  %6886 = vmatprep.subr.bf16.mxu0 %v7073_v5 }
 0x1e2   :  { %v3623_v63 = vpack.c.bf16 %v3587_v58, %v3587_v58  ;;  %6894 = vmatprep.subr.bf16.mxu1 %v7073_v5 }
 0x1e3   :  { %6875 = vmatmul.mubr.msk.bf16.vlgmr.msra.gmra.mrb[132].mxu0 %vm1587_vm1, %v3622_v61 }
 0x1e4   :  { %6887 = vmatpush3.bf16.msra.mxu0 %v7063_v60  ;;  %v3385_v2 = vpop.f32.mrb[64].mxu0  ;;  %6883 = vmatmul.mubr.msk.bf16.vlgmr.msra.gmra.mrb[132].mxu1 %vm1587_vm1, %v3623_v63 }
 0x1e5   :  { %v3386_v4 = vadd.f32 %v5905_v0, %v3385_v2  ;;  %v6604_v6 = vpop.f32.mrb[65].mxu0  ;;  %v3440_v7 = vpop.f32.mrb[64].mxu1  ;;  %6895 = vmatpush3.bf16.msra.mxu1 %v7064_v62  ;;  %6888 = vmatprep.subr.bf16.mxu0 %v7073_v5 }
 0x1e6   :  { %v3441_v9 = vadd.f32 %v5906_v1, %v3440_v7  ;;  %v3388_v10 = vpop.f32.mrb[66].mxu0  ;;  %v6612_v11 = vpop.f32.mrb[65].mxu1  ;;  %6896 = vmatprep.subr.bf16.mxu1 %v7073_v5  ;;  %6890 = vmatprep.mubr.msk.bf16.mxu0 %vm7074_vm0, %v7073_v5 }
 0x1e7   :  { %v3588_v12 = vmax.f32 %v3386_v4, 0.0  ;;  %v6605_v13 = vpop.f32.mrb[67].mxu0  ;;  %v3443_v14 = vpop.f32.mrb[66].mxu1  ;;  %6898 = vmatprep.mubr.msk.bf16.mxu1 %vm7074_vm0, %v7073_v5 }
 0x1e8   :  { %v3589_v15 = vmax.f32 %v3441_v9, 0.0  ;;  %6889 = vmatpush3.bf16.msra.mxu0 %v7065_v3  ;;  %v6613_v16 = vpop.f32.mrb[67].mxu1 }
 0x1e9   :  { %v3624_v18 = vpack.c.bf16 %v3588_v12, %v3588_v12  ;;  %6897 = vmatpush3.bf16.msra.mxu1 %v7066_v8  ;;  %6902 = vmatprep.subr.bf16.mxu0 %v7073_v5 }
 0x1ea   :  { %v3625_v20 = vpack.c.bf16 %v3589_v15, %v3589_v15  ;;  %6910 = vmatprep.subr.bf16.mxu1 %v7073_v5 }
 0x1eb   :  { %6891 = vmatmul.mubr.msk.bf16.vlgmr.msra.gmra.mrb[136].mxu0 %vm1587_vm1, %v3624_v18 }
 0x1ec   :  { %6903 = vmatpush3.bf16.msra.mxu0 %v7067_v17  ;;  %v3495_v23 = vpop.f32.mrb[68].mxu0  ;;  %6899 = vmatmul.mubr.msk.bf16.vlgmr.msra.gmra.mrb[136].mxu1 %vm1587_vm1, %v3625_v20 }
 0x1ed   :  { %v3496_v25 = vadd.f32 %v5907_v21, %v3495_v23  ;;  %v6620_v26 = vpop.f32.mrb[69].mxu0  ;;  %v3550_v27 = vpop.f32.mrb[68].mxu1  ;;  %6911 = vmatpush3.bf16.msra.mxu1 %v7068_v19  ;;  %6904 = vmatprep.subr.bf16.mxu0 %v7073_v5 }
 0x1ee   :  { %v3551_v29 = vadd.f32 %v5908_v22, %v3550_v27  ;;  %v3498_v30 = vpop.f32.mrb[70].mxu0  ;;  %v6628_v31 = vpop.f32.mrb[69].mxu1  ;;  %6912 = vmatprep.subr.bf16.mxu1 %v7073_v5  ;;  %6906 = vmatprep.mubr.msk.bf16.mxu0 %vm7074_vm0, %v7073_v5 }
 0x1ef   :  { %v3590_v32 = vmax.f32 %v3496_v25, 0.0  ;;  %v6621_v33 = vpop.f32.mrb[71].mxu0  ;;  %v3553_v34 = vpop.f32.mrb[70].mxu1  ;;  %6914 = vmatprep.mubr.msk.bf16.mxu1 %vm7074_vm0, %v7073_v5 }
 0x1f0   :  { %v3591_v35 = vmax.f32 %v3551_v29, 0.0  ;;  %6905 = vmatpush3.bf16.msra.mxu0 %v7069_v24  ;;  %v6629_v36 = vpop.f32.mrb[71].mxu1 }
 0x1f1   :  { %v3626_v42 = vpack.c.bf16 %v3590_v32, %v3590_v32  ;;  %6913 = vmatpush3.bf16.msra.mxu1 %v7070_v28 }
 0x1f2   :  { %v3627_v37 = vpack.c.bf16 %v3591_v35, %v3591_v35 }
 0x1f3   :  { %6907 = vmatmul.mubr.msk.bf16.vlgmr.msra.gmra.mrb[140].mxu0 %vm1587_vm1, %v3626_v42 }
 0x1f4   :  { %6915 = vmatmul.mubr.msk.bf16.vlgmr.msra.gmra.mrb[140].mxu1 %vm1587_vm1, %v3627_v37 }
 0x23e   :  { %v3821_v38 = vpop.f32.mrb[72].mxu0  ;;  %v3876_v39 = vpop.f32.mrb[72].mxu1 }
 0x23f   :  { %v5753_v40 = vsel %vm5752_vm2, %v3821_v38, 0.0  ;;  %v5754_v41 = vsel %vm5752_vm2, %v3876_v39, 0.0  ;;  %v6636_v43 = vpop.f32.mrb[73].mxu0  ;;  %v6644_v44 = vpop.f32.mrb[73].mxu1 }
 0x240   :  { %v5755_v5 = vadd.f32 %v5754_v41, %v5753_v40  ;;  %v3824_v45 = vpop.f32.mrb[74].mxu0  ;;  %v3879_v46 = vpop.f32.mrb[74].mxu1 }
 0x241   :  { %v6637_v47 = vpop.f32.mrb[75].mxu0  ;;  %v6645_v48 = vpop.f32.mrb[75].mxu1 }
 0x246   :  { %v3931_v49 = vpop.f32.mrb[76].mxu0 }
 0x247   :  { %v5756_v50 = vsel %vm5752_vm2, %v3931_v49, 0.0  ;;  %v6652_v51 = vpop.f32.mrb[77].mxu0  ;;  %v3986_v52 = vpop.f32.mrb[76].mxu1 }
 0x248   :  { %v5757_v53 = vadd.f32 %v5756_v50, %v5755_v5  ;;  %v5758_v54 = vsel %vm5752_vm2, %v3986_v52, 0.0  ;;  %v3934_v55 = vpop.f32.mrb[78].mxu0  ;;  %v6660_v56 = vpop.f32.mrb[77].mxu1 }
 0x249   :  { %v6653_v57 = vpop.f32.mrb[79].mxu0  ;;  %v3989_v58 = vpop.f32.mrb[78].mxu1 }
 0x24a   :  { %v5759_v59 = vadd.f32 %v5758_v54, %v5757_v53  ;;  %v6661_v60 = vpop.f32.mrb[79].mxu1 }
 0x24e   :  { %v4041_v61 = vpop.f32.mrb[80].mxu0 }
 0x24f   :  { %v5760_v62 = vsel %vm5752_vm2, %v4041_v61, 0.0  ;;  %v6668_v63 = vpop.f32.mrb[81].mxu0  ;;  %v4096_v0 = vpop.f32.mrb[80].mxu1 }
 0x250   :  { %v5761_v1 = vadd.f32 %v5760_v62, %v5759_v59  ;;  %v5762_v2 = vsel %vm5752_vm2, %v4096_v0, 0.0  ;;  %v4044_v3 = vpop.f32.mrb[82].mxu0  ;;  %v6676_v4 = vpop.f32.mrb[81].mxu1 }
 0x251   :  { %v6669_v6 = vpop.f32.mrb[83].mxu0  ;;  %v4099_v7 = vpop.f32.mrb[82].mxu1 }
 0x252   :  { %v5763_v8 = vadd.f32 %v5762_v2, %v5761_v1  ;;  %v6677_v9 = vpop.f32.mrb[83].mxu1 }
 0x256   :  { %v4151_v10 = vpop.f32.mrb[84].mxu0 }
 0x257   :  { %v5764_v11 = vsel %vm5752_vm2, %v4151_v10, 0.0  ;;  %v6684_v12 = vpop.f32.mrb[85].mxu0  ;;  %v4206_v13 = vpop.f32.mrb[84].mxu1 }
 0x258   :  { %v5765_v14 = vadd.f32 %v5764_v11, %v5763_v8  ;;  %v5766_v15 = vsel %vm5752_vm2, %v4206_v13, 0.0  ;;  %v4154_v16 = vpop.f32.mrb[86].mxu0  ;;  %v6692_v17 = vpop.f32.mrb[85].mxu1 }
 0x259   :  { %v6685_v18 = vpop.f32.mrb[87].mxu0  ;;  %v4209_v19 = vpop.f32.mrb[86].mxu1 }
 0x25a   :  { %v5767_v20 = vadd.f32 %v5766_v15, %v5765_v14  ;;  %v6693_v21 = vpop.f32.mrb[87].mxu1 }
 0x25e   :  { %v4261_v22 = vpop.f32.mrb[88].mxu0 }
 0x25f   :  { %v5768_v23 = vsel %vm5752_vm2, %v4261_v22, 0.0  ;;  %v6700_v24 = vpop.f32.mrb[89].mxu0  ;;  %v4316_v25 = vpop.f32.mrb[88].mxu1 }
 0x260   :  { %v5769_v26 = vadd.f32 %v5768_v23, %v5767_v20  ;;  %v5770_v27 = vsel %vm5752_vm2, %v4316_v25, 0.0  ;;  %v4264_v28 = vpop.f32.mrb[90].mxu0  ;;  %v6708_v29 = vpop.f32.mrb[89].mxu1 }
 0x261   :  { %v6701_v30 = vpop.f32.mrb[91].mxu0  ;;  %v4319_v31 = vpop.f32.mrb[90].mxu1 }
 0x262   :  { %v5771_v32 = vadd.f32 %v5770_v27, %v5769_v26  ;;  %v6709_v33 = vpop.f32.mrb[91].mxu1 }
 0x266   :  { %v4371_v34 = vpop.f32.mrb[92].mxu0 }
 0x267   :  { %v5772_v35 = vsel %vm5752_vm2, %v4371_v34, 0.0  ;;  %v6716_v36 = vpop.f32.mrb[93].mxu0  ;;  %v4426_v42 = vpop.f32.mrb[92].mxu1 }
 0x268   :  { %v5773_v37 = vadd.f32 %v5772_v35, %v5771_v32  ;;  %v5774_v38 = vsel %vm5752_vm2, %v4426_v42, 0.0  ;;  %v4374_v39 = vpop.f32.mrb[94].mxu0  ;;  %v6724_v40 = vpop.f32.mrb[93].mxu1 }
 0x269   :  { %v6717_v41 = vpop.f32.mrb[95].mxu0  ;;  %v4429_v43 = vpop.f32.mrb[94].mxu1 }
 0x26a   :  { %v5775_v44 = vadd.f32 %v5774_v38, %v5773_v37  ;;  %v6725_v5 = vpop.f32.mrb[95].mxu1 }
 0x26e   :  { %v4481_v45 = vpop.f32.mrb[96].mxu0 }
 0x26f   :  { %v5776_v46 = vsel %vm5752_vm2, %v4481_v45, 0.0  ;;  %v6732_v47 = vpop.f32.mrb[97].mxu0  ;;  %v4536_v48 = vpop.f32.mrb[96].mxu1 }
 0x270   :  { %v5777_v49 = vadd.f32 %v5776_v46, %v5775_v44  ;;  %v5778_v50 = vsel %vm5752_vm2, %v4536_v48, 0.0  ;;  %v4484_v51 = vpop.f32.mrb[98].mxu0  ;;  %v6740_v52 = vpop.f32.mrb[97].mxu1 }
 0x271   :  { %v6733_v53 = vpop.f32.mrb[99].mxu0  ;;  %v4539_v54 = vpop.f32.mrb[98].mxu1 }
 0x272   :  { %v5779_v55 = vadd.f32 %v5778_v50, %v5777_v49  ;;  %v6741_v56 = vpop.f32.mrb[99].mxu1 }
 0x276   :  { %v4591_v57 = vpop.f32.mrb[100].mxu0 }
 0x277   :  { %v5780_v58 = vsel %vm5752_vm2, %v4591_v57, 0.0  ;;  %v6748_v59 = vpop.f32.mrb[101].mxu0  ;;  %v4646_v60 = vpop.f32.mrb[100].mxu1 }
 0x278   :  { %v5781_v61 = vadd.f32 %v5780_v58, %v5779_v55  ;;  %v5782_v62 = vsel %vm5752_vm2, %v4646_v60, 0.0  ;;  %v4594_v63 = vpop.f32.mrb[102].mxu0  ;;  %v6756_v0 = vpop.f32.mrb[101].mxu1 }
 0x279   :  { %v6749_v1 = vpop.f32.mrb[103].mxu0  ;;  %v4649_v2 = vpop.f32.mrb[102].mxu1 }
 0x27a   :  { %v5783_v3 = vadd.f32 %v5782_v62, %v5781_v61  ;;  %v6757_v4 = vpop.f32.mrb[103].mxu1 }
 0x27e   :  { %v4701_v6 = vpop.f32.mrb[104].mxu0 }
 0x27f   :  { %v5784_v7 = vsel %vm5752_vm2, %v4701_v6, 0.0  ;;  %v6764_v8 = vpop.f32.mrb[105].mxu0  ;;  %v4756_v9 = vpop.f32.mrb[104].mxu1 }
 0x280   :  { %v5785_v10 = vadd.f32 %v5784_v7, %v5783_v3  ;;  %v5786_v11 = vsel %vm5752_vm2, %v4756_v9, 0.0  ;;  %v4704_v12 = vpop.f32.mrb[106].mxu0  ;;  %v6772_v13 = vpop.f32.mrb[105].mxu1 }
 0x281   :  { %v6765_v14 = vpop.f32.mrb[107].mxu0  ;;  %v4759_v15 = vpop.f32.mrb[106].mxu1 }
 0x282   :  { %v5787_v16 = vadd.f32 %v5786_v11, %v5785_v10  ;;  %v6773_v17 = vpop.f32.mrb[107].mxu1 }
 0x286   :  { %v4811_v18 = vpop.f32.mrb[108].mxu0 }
 0x287   :  { %v5788_v19 = vsel %vm5752_vm2, %v4811_v18, 0.0  ;;  %v6780_v20 = vpop.f32.mrb[109].mxu0  ;;  %v4866_v21 = vpop.f32.mrb[108].mxu1 }
 0x288   :  { %v5789_v22 = vadd.f32 %v5788_v19, %v5787_v16  ;;  %v5790_v23 = vsel %vm5752_vm2, %v4866_v21, 0.0  ;;  %v4814_v24 = vpop.f32.mrb[110].mxu0  ;;  %v6788_v25 = vpop.f32.mrb[109].mxu1 }
 0x289   :  { %v6781_v26 = vpop.f32.mrb[111].mxu0  ;;  %v4869_v27 = vpop.f32.mrb[110].mxu1 }
 0x28a   :  { %v5791_v28 = vadd.f32 %v5790_v23, %v5789_v22  ;;  %v6789_v29 = vpop.f32.mrb[111].mxu1 }
 0x28e   :  { %v4921_v30 = vpop.f32.mrb[112].mxu0 }
 0x28f   :  { %v5792_v31 = vsel %vm5752_vm2, %v4921_v30, 0.0  ;;  %v6796_v32 = vpop.f32.mrb[113].mxu0  ;;  %v4976_v33 = vpop.f32.mrb[112].mxu1 }
 0x290   :  { %v5793_v34 = vadd.f32 %v5792_v31, %v5791_v28  ;;  %v5794_v35 = vsel %vm5752_vm2, %v4976_v33, 0.0  ;;  %v4924_v36 = vpop.f32.mrb[114].mxu0  ;;  %v6804_v42 = vpop.f32.mrb[113].mxu1 }
 0x291   :  { %v6797_v37 = vpop.f32.mrb[115].mxu0  ;;  %v4979_v38 = vpop.f32.mrb[114].mxu1 }
 0x292   :  { %v5795_v39 = vadd.f32 %v5794_v35, %v5793_v34  ;;  %v6805_v40 = vpop.f32.mrb[115].mxu1 }
 0x296   :  { %v5031_v41 = vpop.f32.mrb[116].mxu0 }
 0x297   :  { %v5796_v43 = vsel %vm5752_vm2, %v5031_v41, 0.0  ;;  %v6812_v44 = vpop.f32.mrb[117].mxu0  ;;  %v5086_v5 = vpop.f32.mrb[116].mxu1 }
 0x298   :  { %v5797_v45 = vadd.f32 %v5796_v43, %v5795_v39  ;;  %v5798_v46 = vsel %vm5752_vm2, %v5086_v5, 0.0  ;;  %v5034_v47 = vpop.f32.mrb[118].mxu0  ;;  %v6820_v48 = vpop.f32.mrb[117].mxu1 }
 0x299   :  { %v6813_v49 = vpop.f32.mrb[119].mxu0  ;;  %v5089_v50 = vpop.f32.mrb[118].mxu1 }
 0x29a   :  { %v5799_v51 = vadd.f32 %v5798_v46, %v5797_v45  ;;  %v6821_v52 = vpop.f32.mrb[119].mxu1 }
 0x29e   :  { %v5141_v53 = vpop.f32.mrb[120].mxu0 }
 0x29f   :  { %v5800_v54 = vsel %vm5752_vm2, %v5141_v53, 0.0  ;;  %v6828_v55 = vpop.f32.mrb[121].mxu0  ;;  %v5196_v56 = vpop.f32.mrb[120].mxu1 }
 0x2a0   :  { %v5801_v57 = vadd.f32 %v5800_v54, %v5799_v51  ;;  %v5802_v58 = vsel %vm5752_vm2, %v5196_v56, 0.0  ;;  %v5144_v59 = vpop.f32.mrb[122].mxu0  ;;  %v6836_v60 = vpop.f32.mrb[121].mxu1 }
 0x2a1   :  { %v6829_v61 = vpop.f32.mrb[123].mxu0  ;;  %v5199_v62 = vpop.f32.mrb[122].mxu1 }
 0x2a2   :  { %v5803_v63 = vadd.f32 %v5802_v58, %v5801_v57  ;;  %v6837_v0 = vpop.f32.mrb[123].mxu1  ;;  %v6125_v57 = vld [vmem:[%s8464_s6] ss:$0 sm:$0xff] }
 0x2a6   :  { %v5251_v1 = vpop.f32.mrb[124].mxu0 }
 0x2a7   :  { %v5804_v2 = vsel %vm5752_vm2, %v5251_v1, 0.0  ;;  %v6844_v3 = vpop.f32.mrb[125].mxu0  ;;  %v5306_v4 = vpop.f32.mrb[124].mxu1 }
 0x2a8   :  { %v5805_v6 = vadd.f32 %v5804_v2, %v5803_v63  ;;  %v5806_v7 = vsel %vm5752_vm2, %v5306_v4, 0.0  ;;  %v5254_v8 = vpop.f32.mrb[126].mxu0  ;;  %v6852_v9 = vpop.f32.mrb[125].mxu1 }
 0x2a9   :  { %v6845_v10 = vpop.f32.mrb[127].mxu0  ;;  %v5309_v11 = vpop.f32.mrb[126].mxu1 }
 0x2aa   :  { %v5807_v12 = vadd.f32 %v5806_v7, %v5805_v6  ;;  %v6853_v13 = vpop.f32.mrb[127].mxu1 }
 0x2ae   :  { %v5361_v14 = vpop.f32.mrb[128].mxu0 }
 0x2af   :  { %v5808_v15 = vsel %vm5752_vm2, %v5361_v14, 0.0  ;;  %v6860_v16 = vpop.f32.mrb[129].mxu0  ;;  %v5416_v17 = vpop.f32.mrb[128].mxu1 }
 0x2b0   :  { %v5809_v18 = vadd.f32 %v5808_v15, %v5807_v12  ;;  %v5810_v19 = vsel %vm5752_vm2, %v5416_v17, 0.0  ;;  %v5364_v20 = vpop.f32.mrb[130].mxu0  ;;  %v6868_v21 = vpop.f32.mrb[129].mxu1 }
 0x2b1   :  { %v6861_v22 = vpop.f32.mrb[131].mxu0  ;;  %v5419_v23 = vpop.f32.mrb[130].mxu1 }
 0x2b2   :  { %v5811_v24 = vadd.f32 %v5810_v19, %v5809_v18  ;;  %v6869_v25 = vpop.f32.mrb[131].mxu1 }
 0x2b6   :  { %v5471_v26 = vpop.f32.mrb[132].mxu0 }
 0x2b7   :  { %v5812_v27 = vsel %vm5752_vm2, %v5471_v26, 0.0  ;;  %v6876_v28 = vpop.f32.mrb[133].mxu0  ;;  %v5526_v29 = vpop.f32.mrb[132].mxu1 }
 0x2b8   :  { %v5813_v30 = vadd.f32 %v5812_v27, %v5811_v24  ;;  %v5814_v31 = vsel %vm5752_vm2, %v5526_v29, 0.0  ;;  %v5474_v32 = vpop.f32.mrb[134].mxu0  ;;  %v6884_v33 = vpop.f32.mrb[133].mxu1 }
 0x2b9   :  { %v6877_v34 = vpop.f32.mrb[135].mxu0  ;;  %v5529_v35 = vpop.f32.mrb[134].mxu1 }
 0x2ba   :  { %v5815_v36 = vadd.f32 %v5814_v31, %v5813_v30  ;;  %v6885_v42 = vpop.f32.mrb[135].mxu1 }
 0x2be   :  { %v5581_v37 = vpop.f32.mrb[136].mxu0 }
 0x2bf   :  { %v5816_v38 = vsel %vm5752_vm2, %v5581_v37, 0.0  ;;  %v6892_v39 = vpop.f32.mrb[137].mxu0  ;;  %v5636_v40 = vpop.f32.mrb[136].mxu1 }
 0x2c0   :  { %v5817_v41 = vadd.f32 %v5816_v38, %v5815_v36  ;;  %v5818_v43 = vsel %vm5752_vm2, %v5636_v40, 0.0  ;;  %v5584_v44 = vpop.f32.mrb[138].mxu0  ;;  %v6900_v5 = vpop.f32.mrb[137].mxu1 }
 0x2c1   :  { %v6893_v45 = vpop.f32.mrb[139].mxu0  ;;  %v5639_v46 = vpop.f32.mrb[138].mxu1 }
 0x2c2   :  { %v5819_v47 = vadd.f32 %v5818_v43, %v5817_v41  ;;  %v6901_v48 = vpop.f32.mrb[139].mxu1 }
 0x2c6   :  { %v5691_v49 = vpop.f32.mrb[140].mxu0 }
 0x2c7   :  { %v5820_v50 = vsel %vm5752_vm2, %v5691_v49, 0.0  ;;  %v6908_v51 = vpop.f32.mrb[141].mxu0  ;;  %v5746_v52 = vpop.f32.mrb[140].mxu1 }
 0x2c8   :  { %v5821_v53 = vadd.f32 %v5820_v50, %v5819_v47  ;;  %v5822_v54 = vsel %vm5752_vm2, %v5746_v52, 0.0  ;;  %v5694_v55 = vpop.f32.mrb[142].mxu0  ;;  %v6916_v56 = vpop.f32.mrb[141].mxu1 }
 0x2c9   :  { %v6909_v58 = vpop.f32.mrb[143].mxu0  ;;  %v5749_v59 = vpop.f32.mrb[142].mxu1 }
 0x2ca   :  { %v5823_v60 = vadd.f32 %v5822_v54, %v5821_v53  ;;  %v6917_v61 = vpop.f32.mrb[143].mxu1 }
 0x2cc   :  { %v5831_v62 = vadd.f32 %v6125_v57, %v5823_v60 }
 0x2ce   :  { %5832 = vst.msk [vmem:[%s8465_s7] sm:$0xff] %vm5752_vm2, %v5831_v62 }

</bundles_post_ra>
